<compile_context>
chip_gen: v7x
topology: tpu7x:2x2x1
jax: 0.10.0
libtpu: 0.0.40
codegen_flags: <defaults>
</compile_context>

<pallas_src>
import jax
import jax.numpy as jnp
from jax import lax
from jax.experimental import pallas as pl
from jax.experimental.pallas import tpu as pltpu


def _make_gather_kernel(T, mean_sequence):
    """Builds the per-(batch b, token-tile t) kernel.

    Kernel signature (PrefetchScalarGridSpec, num_scalar_prefetch=2):
        kernel(idx_ref, len_ref, table_hbm, out_ref, rows, sems)

      idx_ref   : (B * L_pad,) int32 SMEM  -- flattened, 0-padded token indices
      len_ref   : (B,)         int32 SMEM  -- true sentence lengths (clamped)
      table_hbm : (V, D_pad)   f32 HBM     -- embedding table, never in VMEM
      out_ref   : (1, T, D_pad) VMEM block  (word embeddings)   when not mean
                  (1, D_pad)    VMEM block  (resident mean acc)  when mean
      rows      : (2, T, D_pad) f32 VMEM scratch -- double-buffered gather tile
      sems      : (2, T) DMA semaphores
    """

    def kernel(idx_ref, len_ref, table_hbm, out_ref, rows, sems):
        b = pl.program_id(0)
        t = pl.program_id(1)
        n_t = pl.num_programs(1)
        length = len_ref[b]
        base = (b * n_t + t) * T          # flat offset of this tile's tokens
        slot = t % 2

        def issue(tile_base, s):
            # T concurrent single-row gathers from HBM (static unroll).
            for tok in range(T):
                row = idx_ref[tile_base + tok]
                pltpu.make_async_copy(
                    table_hbm.at[pl.ds(row, 1), :],
                    rows.at[s, pl.ds(tok, 1), :],
                    sems.at[s, tok],
                ).start()

        # Prime the pipeline at the start of each batch row.  Keeping all
        # prefetch logic within one batch row keeps it correct under megacore
        # sharding of the (parallel) batch axis.
        @pl.when(t == 0)
        def _prime():
            issue(base, slot)

        # Wait for the current tile's T row DMAs (src ref only fixes shape).
        for tok in range(T):
            pltpu.make_async_copy(
                table_hbm.at[pl.ds(0, 1), :],
                rows.at[slot, pl.ds(tok, 1), :],
                sems.at[slot, tok],
            ).wait()

        # Prefetch the next tile of this batch row into the other slot so its
        # HBM latency overlaps this tile's store / accumulate / writeback.
        @pl.when(t + 1 < n_t)
        def _prefetch():
            issue(base + T, 1 - slot)

        tile = rows[slot]                  # (T, D_pad) float32

        if mean_sequence:
            mean_ref = out_ref             # (1, D_pad), resident across t axis

            @pl.when(t == 0)
            def _init():
                mean_ref[...] = jnp.zeros_like(mean_ref)

            # Mask padded positions so the mean is over real tokens only.
            pos = t * T + lax.broadcasted_iota(jnp.int32, (T, 1), 0)
            mean_ref[...] += jnp.sum(
                jnp.where(pos < length, tile, 0.0), axis=0, keepdims=True)

            @pl.when(t == n_t - 1)
            def _finalize():
                inv = 1.0 / jnp.maximum(length, 1).astype(jnp.float32)
                mean_ref[...] = mean_ref[...] * inv
        else:
            # Full (T, D_pad) unmasked store.  Padded slots carry table row 0,
            # exactly like torch.nn.Embedding(..., padding_idx=0) forward.
            out_ref[0] = tile

    return kernel


def pretrained_embedding_forward(indices, table, lengths, *,
                                 mean_sequence=False, tokens_per_tile=8):
    """indices: (B, L) int, table: (V, D) f32, lengths: (B,) int.

    Returns (word_embeddings (B, L, D), lengths)        if not mean_sequence
            (mean_embeddings (B, D),    lengths)        if mean_sequence
    """
    indices = jnp.asarray(indices, jnp.int32)
    table = jnp.asarray(table, jnp.float32)
    B, L = indices.shape
    V, D = table.shape
    T = tokens_per_tile
    assert T % 8 == 0, "tokens_per_tile must be a multiple of 8 (sublane tile)"

    n_t = pl.cdiv(L, T)
    L_pad = n_t * T
    D_pad = 128 * pl.cdiv(D, 128)         # lane-dense last dim

    table_p = table if D_pad == D else jnp.pad(table, ((0, 0), (0, D_pad - D)))
    # Clamp so a bad index can never become an out-of-bounds DMA.
    idx = jnp.clip(indices, 0, V - 1)
    if L_pad != L:
        idx = jnp.pad(idx, ((0, 0), (0, L_pad - L)))     # pad with index 0
    idx_flat = idx.reshape(B * L_pad)                    # 1-D SMEM layout
    lens = jnp.clip(jnp.asarray(lengths, jnp.int32), 0, L)

    kernel = _make_gather_kernel(T, mean_sequence)

    if mean_sequence:
        out_shape = jax.ShapeDtypeStruct((B, D_pad), jnp.float32)
        # Block index constant across the t (reduction) axis -> resident acc.
        out_spec = pl.BlockSpec((1, D_pad), lambda b, t, idx_r, len_r: (b, 0))
    else:
        out_shape = jax.ShapeDtypeStruct((B, L_pad, D_pad), jnp.float32)
        out_spec = pl.BlockSpec((1, T, D_pad),
                                lambda b, t, idx_r, len_r: (b, t, 0))

    grid_spec = pltpu.PrefetchScalarGridSpec(
        num_scalar_prefetch=2,             # idx_flat, lens -> SMEM
        grid=(B, n_t),
        in_specs=[pl.BlockSpec(memory_space=pl.ANY)],   # table stays in HBM
        out_specs=out_spec,
        scratch_shapes=[
            pltpu.VMEM((2, T, D_pad), jnp.float32),     # double-buffered tile
            pltpu.SemaphoreType.DMA((2, T)),
        ],
    )

    out = pl.pallas_call(
        kernel,
        grid_spec=grid_spec,
        out_shape=out_shape,
        compiler_params=pltpu.CompilerParams(
            # batch axis parallel (both TensorCores on v7x),
            # token-tile axis is the reduction / pipelined axis -> arbitrary.
            dimension_semantics=("parallel", "arbitrary"),
        ),
    )(idx_flat, lens, table_p)

    if mean_sequence:
        result = out if D_pad == D else out[:, :D]
    else:
        result = out if (L_pad == L and D_pad == D) else out[:, :L, :D]
    return result, lengths


# ----------------------------------------------------------------------------
# Host-side "glue" replicating the string handling of the module's forward().
# TODO(synk): word_tokenize / word2idx dict lookups and the column cache
# (get_history_emb / get_columns_emb) are pure Python string processing with
# no Pallas equivalent; kept host-side.
# ----------------------------------------------------------------------------
def tokenize(sentence):
    return sentence.lower().split()


def sentences_to_indices(sentences, word2idx):
    if not isinstance(sentences, list):
        sentences = [sentences]
    tokenized = [tokenize(s) for s in sentences]
    lengths = [len(t) for t in tokenized]
    max_len = max(1, max(lengths))
    batch = len(sentences)
    idx = [[0] * max_len for _ in range(batch)]
    for i, toks in enumerate(tokenized):
        for j, w in enumerate(toks):
            idx[i][j] = word2idx.get(w, 0)
    return (jnp.asarray(idx, jnp.int32), jnp.asarray(lengths, jnp.int32))


if __name__ == "__main__":
    # Synthetic "pretrained" embedding: vocab=64, dim=32.
    num_embeddings, embedding_dim = 64, 32
    key = jax.random.PRNGKey(0)
    vectors = jax.random.normal(key, (num_embeddings, embedding_dim), jnp.float32)
    # Row 0 is the padding / unknown-word row; zero it (typical pretrained setup).
    vectors = vectors.at[0].set(0.0)

    vocab = ["the", "cat", "sat", "on", "mat", "hello", "world", "select",
             "min", "max", "col1", "col2", "text", "db"]
    word2idx = {w: i + 1 for i, w in enumerate(vocab)}  # 0 reserved for pad/unk

    sentences = [
        "the cat sat on the mat hello world the cat sat on the mat",  # 14 tokens
        "hello world",                                                 # 2 tokens
    ]
    indices, lengths = sentences_to_indices(sentences, word2idx)  # (2, 14), (2,)

    # mean_sequence=False path: full word embeddings.
    emb, lens_out = pretrained_embedding_forward(indices, vectors, lengths)
    # mean_sequence=True path: only the (B, D) mean is produced (no slab).
    mean_emb, _ = pretrained_embedding_forward(indices, vectors, lengths,
                                               mean_sequence=True)
    jax.block_until_ready((emb, mean_emb))

    # Pure-JAX reference check.
    B, L = indices.shape
    ref_emb = jnp.take(vectors, jnp.clip(indices, 0, num_embeddings - 1), axis=0)
    mask = (jnp.arange(L)[None, :] < lengths[:, None]).astype(jnp.float32)
    ref_mean = jnp.sum(ref_emb * mask[..., None], axis=1) / jnp.maximum(
        lengths, 1).astype(jnp.float32)[:, None]

    assert emb.shape == (B, L, embedding_dim)
    assert mean_emb.shape == (B, embedding_dim)
    assert lens_out.shape == (B,)
    assert jnp.allclose(emb, ref_emb, atol=1e-5)
    assert jnp.allclose(mean_emb, ref_mean, atol=1e-5)

    print("KERNEL_OK")
</pallas_src>

<mosaic_0001>
module attributes {stable_mosaic.version = 11 : i64} {
  func.func @kernel(%arg0: i32, %arg1: i32, %arg2: memref<32xi32, #tpu.memory_space<smem>>, %arg3: memref<2xi32, #tpu.memory_space<smem>>, %arg4: memref<64x128xf32, #tpu.memory_space<any>>, %arg5: memref<1x8x128xf32, #tpu.memory_space<vmem>>, %arg6: memref<2x8x128xf32, #tpu.memory_space<vmem>>, %arg7: memref<2x8x!tpu.dma_semaphore, #tpu.memory_space<semaphore_mem>>) attributes {dimension_semantics = [#tpu.dimension_semantics<parallel>, #tpu.dimension_semantics<arbitrary>], iteration_bounds = array<i64: 2, 2>, scalar_prefetch = 2 : i64, scratch_operands = 2 : i64, tpu.core_type = #tpu.core_type<tc>, window_params = [{}, {transform_indices = @transform_1, window_bounds = array<i64: 1, 8, 128>}]} {
    %c2_i32 = arith.constant 2 : i32
    %0 = arith.muli %arg0, %c2_i32 : i32
    %1 = arith.addi %0, %arg1 : i32
    %c8_i32 = arith.constant 8 : i32
    %2 = arith.muli %1, %c8_i32 : i32
    %c2_i32_0 = arith.constant 2 : i32
    %c0_i32 = arith.constant 0 : i32
    %3 = arith.cmpi eq, %c2_i32_0, %c0_i32 : i32
    %c1_i32 = arith.constant 1 : i32
    %4 = arith.select %3, %c1_i32, %c2_i32_0 : i32
    %5 = arith.remsi %arg1, %4 : i32
    %c0_i32_1 = arith.constant 0 : i32
    %6 = arith.cmpi ne, %5, %c0_i32_1 : i32
    %c0_i32_2 = arith.constant 0 : i32
    %7 = arith.cmpi slt, %5, %c0_i32_2 : i32
    %c0_i32_3 = arith.constant 0 : i32
    %8 = arith.cmpi slt, %4, %c0_i32_3 : i32
    %9 = arith.xori %7, %8 : i1
    %10 = arith.andi %9, %6 : i1
    %11 = arith.addi %5, %4 : i32
    %12 = arith.select %10, %11, %5 : i32
    %c0_i32_4 = arith.constant 0 : i32
    %13 = arith.cmpi eq, %arg1, %c0_i32_4 : i32
    %14 = arith.extui %13 : i1 to i32
    %c0_i32_5 = arith.constant 0 : i32
    %15 = arith.cmpi ne, %14, %c0_i32_5 : i32
    scf.if %15 {
      %c0_i32_48 = arith.constant 0 : i32
      %66 = arith.addi %2, %c0_i32_48 : i32
      %67 = arith.index_cast %66 : i32 to index
      %68 = memref.load %arg2[%67] : memref<32xi32, #tpu.memory_space<smem>>
      %c0_i32_49 = arith.constant 0 : i32
      %c0_i32_50 = arith.constant 0 : i32
      %69 = tpu.memref_slice %arg4[%68, %c0_i32_50] : memref<64x128xf32, #tpu.memory_space<any>> -> memref<1x128xf32, #tpu.memory_space<any>>
      %c0_i32_51 = arith.constant 0 : i32
      %c0_i32_52 = arith.constant 0 : i32
      %70 = tpu.memref_slice %arg6[%12, %c0_i32_51, %c0_i32_52] : memref<2x8x128xf32, #tpu.memory_space<vmem>> -> memref<1x1x128xf32, #tpu.memory_space<vmem>>
      %71 = tpu.memref_squeeze %70 : memref<1x1x128xf32, #tpu.memory_space<vmem>> -> memref<1x128xf32, #tpu.memory_space<vmem>>
      %72 = tpu.memref_slice %arg7[%12, %c0_i32_49] : memref<2x8x!tpu.dma_semaphore, #tpu.memory_space<semaphore_mem>> -> memref<1x1x!tpu.dma_semaphore, #tpu.memory_space<semaphore_mem>>
      %73 = tpu.memref_squeeze %72 : memref<1x1x!tpu.dma_semaphore, #tpu.memory_space<semaphore_mem>> -> memref<!tpu.dma_semaphore, #tpu.memory_space<semaphore_mem>>
      tpu.enqueue_dma source(%69 : memref<1x128xf32, #tpu.memory_space<any>>) target(%71 : memref<1x128xf32, #tpu.memory_space<vmem>>) target_semaphore(%73 : memref<!tpu.dma_semaphore, #tpu.memory_space<semaphore_mem>>)
      %c1_i32_53 = arith.constant 1 : i32
      %74 = arith.addi %2, %c1_i32_53 : i32
      %75 = arith.index_cast %74 : i32 to index
      %76 = memref.load %arg2[%75] : memref<32xi32, #tpu.memory_space<smem>>
      %c1_i32_54 = arith.constant 1 : i32
      %c0_i32_55 = arith.constant 0 : i32
      %77 = tpu.memref_slice %arg4[%76, %c0_i32_55] : memref<64x128xf32, #tpu.memory_space<any>> -> memref<1x128xf32, #tpu.memory_space<any>>
      %c1_i32_56 = arith.constant 1 : i32
      %c0_i32_57 = arith.constant 0 : i32
      %78 = tpu.memref_slice %arg6[%12, %c1_i32_56, %c0_i32_57] : memref<2x8x128xf32, #tpu.memory_space<vmem>> -> memref<1x1x128xf32, #tpu.memory_space<vmem>>
      %79 = tpu.memref_squeeze %78 : memref<1x1x128xf32, #tpu.memory_space<vmem>> -> memref<1x128xf32, #tpu.memory_space<vmem>>
      %80 = tpu.memref_slice %arg7[%12, %c1_i32_54] : memref<2x8x!tpu.dma_semaphore, #tpu.memory_space<semaphore_mem>> -> memref<1x1x!tpu.dma_semaphore, #tpu.memory_space<semaphore_mem>>
      %81 = tpu.memref_squeeze %80 : memref<1x1x!tpu.dma_semaphore, #tpu.memory_space<semaphore_mem>> -> memref<!tpu.dma_semaphore, #tpu.memory_space<semaphore_mem>>
      tpu.enqueue_dma source(%77 : memref<1x128xf32, #tpu.memory_space<any>>) target(%79 : memref<1x128xf32, #tpu.memory_space<vmem>>) target_semaphore(%81 : memref<!tpu.dma_semaphore, #tpu.memory_space<semaphore_mem>>)
      %c2_i32_58 = arith.constant 2 : i32
      %82 = arith.addi %2, %c2_i32_58 : i32
      %83 = arith.index_cast %82 : i32 to index
      %84 = memref.load %arg2[%83] : memref<32xi32, #tpu.memory_space<smem>>
      %c2_i32_59 = arith.constant 2 : i32
      %c0_i32_60 = arith.constant 0 : i32
      %85 = tpu.memref_slice %arg4[%84, %c0_i32_60] : memref<64x128xf32, #tpu.memory_space<any>> -> memref<1x128xf32, #tpu.memory_space<any>>
      %c2_i32_61 = arith.constant 2 : i32
      %c0_i32_62 = arith.constant 0 : i32
      %86 = tpu.memref_slice %arg6[%12, %c2_i32_61, %c0_i32_62] : memref<2x8x128xf32, #tpu.memory_space<vmem>> -> memref<1x1x128xf32, #tpu.memory_space<vmem>>
      %87 = tpu.memref_squeeze %86 : memref<1x1x128xf32, #tpu.memory_space<vmem>> -> memref<1x128xf32, #tpu.memory_space<vmem>>
      %88 = tpu.memref_slice %arg7[%12, %c2_i32_59] : memref<2x8x!tpu.dma_semaphore, #tpu.memory_space<semaphore_mem>> -> memref<1x1x!tpu.dma_semaphore, #tpu.memory_space<semaphore_mem>>
      %89 = tpu.memref_squeeze %88 : memref<1x1x!tpu.dma_semaphore, #tpu.memory_space<semaphore_mem>> -> memref<!tpu.dma_semaphore, #tpu.memory_space<semaphore_mem>>
      tpu.enqueue_dma source(%85 : memref<1x128xf32, #tpu.memory_space<any>>) target(%87 : memref<1x128xf32, #tpu.memory_space<vmem>>) target_semaphore(%89 : memref<!tpu.dma_semaphore, #tpu.memory_space<semaphore_mem>>)
      %c3_i32_63 = arith.constant 3 : i32
      %90 = arith.addi %2, %c3_i32_63 : i32
      %91 = arith.index_cast %90 : i32 to index
      %92 = memref.load %arg2[%91] : memref<32xi32, #tpu.memory_space<smem>>
      %c3_i32_64 = arith.constant 3 : i32
      %c0_i32_65 = arith.constant 0 : i32
      %93 = tpu.memref_slice %arg4[%92, %c0_i32_65] : memref<64x128xf32, #tpu.memory_space<any>> -> memref<1x128xf32, #tpu.memory_space<any>>
      %c3_i32_66 = arith.constant 3 : i32
      %c0_i32_67 = arith.constant 0 : i32
      %94 = tpu.memref_slice %arg6[%12, %c3_i32_66, %c0_i32_67] : memref<2x8x128xf32, #tpu.memory_space<vmem>> -> memref<1x1x128xf32, #tpu.memory_space<vmem>>
      %95 = tpu.memref_squeeze %94 : memref<1x1x128xf32, #tpu.memory_space<vmem>> -> memref<1x128xf32, #tpu.memory_space<vmem>>
      %96 = tpu.memref_slice %arg7[%12, %c3_i32_64] : memref<2x8x!tpu.dma_semaphore, #tpu.memory_space<semaphore_mem>> -> memref<1x1x!tpu.dma_semaphore, #tpu.memory_space<semaphore_mem>>
      %97 = tpu.memref_squeeze %96 : memref<1x1x!tpu.dma_semaphore, #tpu.memory_space<semaphore_mem>> -> memref<!tpu.dma_semaphore, #tpu.memory_space<semaphore_mem>>
      tpu.enqueue_dma source(%93 : memref<1x128xf32, #tpu.memory_space<any>>) target(%95 : memref<1x128xf32, #tpu.memory_space<vmem>>) target_semaphore(%97 : memref<!tpu.dma_semaphore, #tpu.memory_space<semaphore_mem>>)
      %c4_i32_68 = arith.constant 4 : i32
      %98 = arith.addi %2, %c4_i32_68 : i32
      %99 = arith.index_cast %98 : i32 to index
      %100 = memref.load %arg2[%99] : memref<32xi32, #tpu.memory_space<smem>>
      %c4_i32_69 = arith.constant 4 : i32
      %c0_i32_70 = arith.constant 0 : i32
      %101 = tpu.memref_slice %arg4[%100, %c0_i32_70] : memref<64x128xf32, #tpu.memory_space<any>> -> memref<1x128xf32, #tpu.memory_space<any>>
      %c4_i32_71 = arith.constant 4 : i32
      %c0_i32_72 = arith.constant 0 : i32
      %102 = tpu.memref_slice %arg6[%12, %c4_i32_71, %c0_i32_72] : memref<2x8x128xf32, #tpu.memory_space<vmem>> -> memref<1x1x128xf32, #tpu.memory_space<vmem>>
      %103 = tpu.memref_squeeze %102 : memref<1x1x128xf32, #tpu.memory_space<vmem>> -> memref<1x128xf32, #tpu.memory_space<vmem>>
      %104 = tpu.memref_slice %arg7[%12, %c4_i32_69] : memref<2x8x!tpu.dma_semaphore, #tpu.memory_space<semaphore_mem>> -> memref<1x1x!tpu.dma_semaphore, #tpu.memory_space<semaphore_mem>>
      %105 = tpu.memref_squeeze %104 : memref<1x1x!tpu.dma_semaphore, #tpu.memory_space<semaphore_mem>> -> memref<!tpu.dma_semaphore, #tpu.memory_space<semaphore_mem>>
      tpu.enqueue_dma source(%101 : memref<1x128xf32, #tpu.memory_space<any>>) target(%103 : memref<1x128xf32, #tpu.memory_space<vmem>>) target_semaphore(%105 : memref<!tpu.dma_semaphore, #tpu.memory_space<semaphore_mem>>)
      %c5_i32_73 = arith.constant 5 : i32
      %106 = arith.addi %2, %c5_i32_73 : i32
      %107 = arith.index_cast %106 : i32 to index
      %108 = memref.load %arg2[%107] : memref<32xi32, #tpu.memory_space<smem>>
      %c5_i32_74 = arith.constant 5 : i32
      %c0_i32_75 = arith.constant 0 : i32
      %109 = tpu.memref_slice %arg4[%108, %c0_i32_75] : memref<64x128xf32, #tpu.memory_space<any>> -> memref<1x128xf32, #tpu.memory_space<any>>
      %c5_i32_76 = arith.constant 5 : i32
      %c0_i32_77 = arith.constant 0 : i32
      %110 = tpu.memref_slice %arg6[%12, %c5_i32_76, %c0_i32_77] : memref<2x8x128xf32, #tpu.memory_space<vmem>> -> memref<1x1x128xf32, #tpu.memory_space<vmem>>
      %111 = tpu.memref_squeeze %110 : memref<1x1x128xf32, #tpu.memory_space<vmem>> -> memref<1x128xf32, #tpu.memory_space<vmem>>
      %112 = tpu.memref_slice %arg7[%12, %c5_i32_74] : memref<2x8x!tpu.dma_semaphore, #tpu.memory_space<semaphore_mem>> -> memref<1x1x!tpu.dma_semaphore, #tpu.memory_space<semaphore_mem>>
      %113 = tpu.memref_squeeze %112 : memref<1x1x!tpu.dma_semaphore, #tpu.memory_space<semaphore_mem>> -> memref<!tpu.dma_semaphore, #tpu.memory_space<semaphore_mem>>
      tpu.enqueue_dma source(%109 : memref<1x128xf32, #tpu.memory_space<any>>) target(%111 : memref<1x128xf32, #tpu.memory_space<vmem>>) target_semaphore(%113 : memref<!tpu.dma_semaphore, #tpu.memory_space<semaphore_mem>>)
      %c6_i32_78 = arith.constant 6 : i32
      %114 = arith.addi %2, %c6_i32_78 : i32
      %115 = arith.index_cast %114 : i32 to index
      %116 = memref.load %arg2[%115] : memref<32xi32, #tpu.memory_space<smem>>
      %c6_i32_79 = arith.constant 6 : i32
      %c0_i32_80 = arith.constant 0 : i32
      %117 = tpu.memref_slice %arg4[%116, %c0_i32_80] : memref<64x128xf32, #tpu.memory_space<any>> -> memref<1x128xf32, #tpu.memory_space<any>>
      %c6_i32_81 = arith.constant 6 : i32
      %c0_i32_82 = arith.constant 0 : i32
      %118 = tpu.memref_slice %arg6[%12, %c6_i32_81, %c0_i32_82] : memref<2x8x128xf32, #tpu.memory_space<vmem>> -> memref<1x1x128xf32, #tpu.memory_space<vmem>>
      %119 = tpu.memref_squeeze %118 : memref<1x1x128xf32, #tpu.memory_space<vmem>> -> memref<1x128xf32, #tpu.memory_space<vmem>>
      %120 = tpu.memref_slice %arg7[%12, %c6_i32_79] : memref<2x8x!tpu.dma_semaphore, #tpu.memory_space<semaphore_mem>> -> memref<1x1x!tpu.dma_semaphore, #tpu.memory_space<semaphore_mem>>
      %121 = tpu.memref_squeeze %120 : memref<1x1x!tpu.dma_semaphore, #tpu.memory_space<semaphore_mem>> -> memref<!tpu.dma_semaphore, #tpu.memory_space<semaphore_mem>>
      tpu.enqueue_dma source(%117 : memref<1x128xf32, #tpu.memory_space<any>>) target(%119 : memref<1x128xf32, #tpu.memory_space<vmem>>) target_semaphore(%121 : memref<!tpu.dma_semaphore, #tpu.memory_space<semaphore_mem>>)
      %c7_i32_83 = arith.constant 7 : i32
      %122 = arith.addi %2, %c7_i32_83 : i32
      %123 = arith.index_cast %122 : i32 to index
      %124 = memref.load %arg2[%123] : memref<32xi32, #tpu.memory_space<smem>>
      %c7_i32_84 = arith.constant 7 : i32
      %c0_i32_85 = arith.constant 0 : i32
      %125 = tpu.memref_slice %arg4[%124, %c0_i32_85] : memref<64x128xf32, #tpu.memory_space<any>> -> memref<1x128xf32, #tpu.memory_space<any>>
      %c7_i32_86 = arith.constant 7 : i32
      %c0_i32_87 = arith.constant 0 : i32
      %126 = tpu.memref_slice %arg6[%12, %c7_i32_86, %c0_i32_87] : memref<2x8x128xf32, #tpu.memory_space<vmem>> -> memref<1x1x128xf32, #tpu.memory_space<vmem>>
      %127 = tpu.memref_squeeze %126 : memref<1x1x128xf32, #tpu.memory_space<vmem>> -> memref<1x128xf32, #tpu.memory_space<vmem>>
      %128 = tpu.memref_slice %arg7[%12, %c7_i32_84] : memref<2x8x!tpu.dma_semaphore, #tpu.memory_space<semaphore_mem>> -> memref<1x1x!tpu.dma_semaphore, #tpu.memory_space<semaphore_mem>>
      %129 = tpu.memref_squeeze %128 : memref<1x1x!tpu.dma_semaphore, #tpu.memory_space<semaphore_mem>> -> memref<!tpu.dma_semaphore, #tpu.memory_space<semaphore_mem>>
      tpu.enqueue_dma source(%125 : memref<1x128xf32, #tpu.memory_space<any>>) target(%127 : memref<1x128xf32, #tpu.memory_space<vmem>>) target_semaphore(%129 : memref<!tpu.dma_semaphore, #tpu.memory_space<semaphore_mem>>)
    } else {
    }
    %c0_i32_6 = arith.constant 0 : i32
    %c0_i32_7 = arith.constant 0 : i32
    %c0_i32_8 = arith.constant 0 : i32
    %16 = tpu.memref_slice %arg4[%c0_i32_7, %c0_i32_8] : memref<64x128xf32, #tpu.memory_space<any>> -> memref<1x128xf32, #tpu.memory_space<any>>
    %c0_i32_9 = arith.constant 0 : i32
    %c0_i32_10 = arith.constant 0 : i32
    %17 = tpu.memref_slice %arg6[%12, %c0_i32_9, %c0_i32_10] : memref<2x8x128xf32, #tpu.memory_space<vmem>> -> memref<1x1x128xf32, #tpu.memory_space<vmem>>
    %18 = tpu.memref_squeeze %17 : memref<1x1x128xf32, #tpu.memory_space<vmem>> -> memref<1x128xf32, #tpu.memory_space<vmem>>
    %19 = tpu.memref_slice %arg7[%12, %c0_i32_6] : memref<2x8x!tpu.dma_semaphore, #tpu.memory_space<semaphore_mem>> -> memref<1x1x!tpu.dma_semaphore, #tpu.memory_space<semaphore_mem>>
    %20 = tpu.memref_squeeze %19 : memref<1x1x!tpu.dma_semaphore, #tpu.memory_space<semaphore_mem>> -> memref<!tpu.dma_semaphore, #tpu.memory_space<semaphore_mem>>
    tpu.wait_dma2 semaphore(%20 : memref<!tpu.dma_semaphore, #tpu.memory_space<semaphore_mem>>) src(%16 : memref<1x128xf32, #tpu.memory_space<any>>) dst(%18 : memref<1x128xf32, #tpu.memory_space<vmem>>)
    %c1_i32_11 = arith.constant 1 : i32
    %c0_i32_12 = arith.constant 0 : i32
    %c0_i32_13 = arith.constant 0 : i32
    %21 = tpu.memref_slice %arg4[%c0_i32_12, %c0_i32_13] : memref<64x128xf32, #tpu.memory_space<any>> -> memref<1x128xf32, #tpu.memory_space<any>>
    %c1_i32_14 = arith.constant 1 : i32
    %c0_i32_15 = arith.constant 0 : i32
    %22 = tpu.memref_slice %arg6[%12, %c1_i32_14, %c0_i32_15] : memref<2x8x128xf32, #tpu.memory_space<vmem>> -> memref<1x1x128xf32, #tpu.memory_space<vmem>>
    %23 = tpu.memref_squeeze %22 : memref<1x1x128xf32, #tpu.memory_space<vmem>> -> memref<1x128xf32, #tpu.memory_space<vmem>>
    %24 = tpu.memref_slice %arg7[%12, %c1_i32_11] : memref<2x8x!tpu.dma_semaphore, #tpu.memory_space<semaphore_mem>> -> memref<1x1x!tpu.dma_semaphore, #tpu.memory_space<semaphore_mem>>
    %25 = tpu.memref_squeeze %24 : memref<1x1x!tpu.dma_semaphore, #tpu.memory_space<semaphore_mem>> -> memref<!tpu.dma_semaphore, #tpu.memory_space<semaphore_mem>>
    tpu.wait_dma2 semaphore(%25 : memref<!tpu.dma_semaphore, #tpu.memory_space<semaphore_mem>>) src(%21 : memref<1x128xf32, #tpu.memory_space<any>>) dst(%23 : memref<1x128xf32, #tpu.memory_space<vmem>>)
    %c2_i32_16 = arith.constant 2 : i32
    %c0_i32_17 = arith.constant 0 : i32
    %c0_i32_18 = arith.constant 0 : i32
    %26 = tpu.memref_slice %arg4[%c0_i32_17, %c0_i32_18] : memref<64x128xf32, #tpu.memory_space<any>> -> memref<1x128xf32, #tpu.memory_space<any>>
    %c2_i32_19 = arith.constant 2 : i32
    %c0_i32_20 = arith.constant 0 : i32
    %27 = tpu.memref_slice %arg6[%12, %c2_i32_19, %c0_i32_20] : memref<2x8x128xf32, #tpu.memory_space<vmem>> -> memref<1x1x128xf32, #tpu.memory_space<vmem>>
    %28 = tpu.memref_squeeze %27 : memref<1x1x128xf32, #tpu.memory_space<vmem>> -> memref<1x128xf32, #tpu.memory_space<vmem>>
    %29 = tpu.memref_slice %arg7[%12, %c2_i32_16] : memref<2x8x!tpu.dma_semaphore, #tpu.memory_space<semaphore_mem>> -> memref<1x1x!tpu.dma_semaphore, #tpu.memory_space<semaphore_mem>>
    %30 = tpu.memref_squeeze %29 : memref<1x1x!tpu.dma_semaphore, #tpu.memory_space<semaphore_mem>> -> memref<!tpu.dma_semaphore, #tpu.memory_space<semaphore_mem>>
    tpu.wait_dma2 semaphore(%30 : memref<!tpu.dma_semaphore, #tpu.memory_space<semaphore_mem>>) src(%26 : memref<1x128xf32, #tpu.memory_space<any>>) dst(%28 : memref<1x128xf32, #tpu.memory_space<vmem>>)
    %c3_i32 = arith.constant 3 : i32
    %c0_i32_21 = arith.constant 0 : i32
    %c0_i32_22 = arith.constant 0 : i32
    %31 = tpu.memref_slice %arg4[%c0_i32_21, %c0_i32_22] : memref<64x128xf32, #tpu.memory_space<any>> -> memref<1x128xf32, #tpu.memory_space<any>>
    %c3_i32_23 = arith.constant 3 : i32
    %c0_i32_24 = arith.constant 0 : i32
    %32 = tpu.memref_slice %arg6[%12, %c3_i32_23, %c0_i32_24] : memref<2x8x128xf32, #tpu.memory_space<vmem>> -> memref<1x1x128xf32, #tpu.memory_space<vmem>>
    %33 = tpu.memref_squeeze %32 : memref<1x1x128xf32, #tpu.memory_space<vmem>> -> memref<1x128xf32, #tpu.memory_space<vmem>>
    %34 = tpu.memref_slice %arg7[%12, %c3_i32] : memref<2x8x!tpu.dma_semaphore, #tpu.memory_space<semaphore_mem>> -> memref<1x1x!tpu.dma_semaphore, #tpu.memory_space<semaphore_mem>>
    %35 = tpu.memref_squeeze %34 : memref<1x1x!tpu.dma_semaphore, #tpu.memory_space<semaphore_mem>> -> memref<!tpu.dma_semaphore, #tpu.memory_space<semaphore_mem>>
    tpu.wait_dma2 semaphore(%35 : memref<!tpu.dma_semaphore, #tpu.memory_space<semaphore_mem>>) src(%31 : memref<1x128xf32, #tpu.memory_space<any>>) dst(%33 : memref<1x128xf32, #tpu.memory_space<vmem>>)
    %c4_i32 = arith.constant 4 : i32
    %c0_i32_25 = arith.constant 0 : i32
    %c0_i32_26 = arith.constant 0 : i32
    %36 = tpu.memref_slice %arg4[%c0_i32_25, %c0_i32_26] : memref<64x128xf32, #tpu.memory_space<any>> -> memref<1x128xf32, #tpu.memory_space<any>>
    %c4_i32_27 = arith.constant 4 : i32
    %c0_i32_28 = arith.constant 0 : i32
    %37 = tpu.memref_slice %arg6[%12, %c4_i32_27, %c0_i32_28] : memref<2x8x128xf32, #tpu.memory_space<vmem>> -> memref<1x1x128xf32, #tpu.memory_space<vmem>>
    %38 = tpu.memref_squeeze %37 : memref<1x1x128xf32, #tpu.memory_space<vmem>> -> memref<1x128xf32, #tpu.memory_space<vmem>>
    %39 = tpu.memref_slice %arg7[%12, %c4_i32] : memref<2x8x!tpu.dma_semaphore, #tpu.memory_space<semaphore_mem>> -> memref<1x1x!tpu.dma_semaphore, #tpu.memory_space<semaphore_mem>>
    %40 = tpu.memref_squeeze %39 : memref<1x1x!tpu.dma_semaphore, #tpu.memory_space<semaphore_mem>> -> memref<!tpu.dma_semaphore, #tpu.memory_space<semaphore_mem>>
    tpu.wait_dma2 semaphore(%40 : memref<!tpu.dma_semaphore, #tpu.memory_space<semaphore_mem>>) src(%36 : memref<1x128xf32, #tpu.memory_space<any>>) dst(%38 : memref<1x128xf32, #tpu.memory_space<vmem>>)
    %c5_i32 = arith.constant 5 : i32
    %c0_i32_29 = arith.constant 0 : i32
    %c0_i32_30 = arith.constant 0 : i32
    %41 = tpu.memref_slice %arg4[%c0_i32_29, %c0_i32_30] : memref<64x128xf32, #tpu.memory_space<any>> -> memref<1x128xf32, #tpu.memory_space<any>>
    %c5_i32_31 = arith.constant 5 : i32
    %c0_i32_32 = arith.constant 0 : i32
    %42 = tpu.memref_slice %arg6[%12, %c5_i32_31, %c0_i32_32] : memref<2x8x128xf32, #tpu.memory_space<vmem>> -> memref<1x1x128xf32, #tpu.memory_space<vmem>>
    %43 = tpu.memref_squeeze %42 : memref<1x1x128xf32, #tpu.memory_space<vmem>> -> memref<1x128xf32, #tpu.memory_space<vmem>>
    %44 = tpu.memref_slice %arg7[%12, %c5_i32] : memref<2x8x!tpu.dma_semaphore, #tpu.memory_space<semaphore_mem>> -> memref<1x1x!tpu.dma_semaphore, #tpu.memory_space<semaphore_mem>>
    %45 = tpu.memref_squeeze %44 : memref<1x1x!tpu.dma_semaphore, #tpu.memory_space<semaphore_mem>> -> memref<!tpu.dma_semaphore, #tpu.memory_space<semaphore_mem>>
    tpu.wait_dma2 semaphore(%45 : memref<!tpu.dma_semaphore, #tpu.memory_space<semaphore_mem>>) src(%41 : memref<1x128xf32, #tpu.memory_space<any>>) dst(%43 : memref<1x128xf32, #tpu.memory_space<vmem>>)
    %c6_i32 = arith.constant 6 : i32
    %c0_i32_33 = arith.constant 0 : i32
    %c0_i32_34 = arith.constant 0 : i32
    %46 = tpu.memref_slice %arg4[%c0_i32_33, %c0_i32_34] : memref<64x128xf32, #tpu.memory_space<any>> -> memref<1x128xf32, #tpu.memory_space<any>>
    %c6_i32_35 = arith.constant 6 : i32
    %c0_i32_36 = arith.constant 0 : i32
    %47 = tpu.memref_slice %arg6[%12, %c6_i32_35, %c0_i32_36] : memref<2x8x128xf32, #tpu.memory_space<vmem>> -> memref<1x1x128xf32, #tpu.memory_space<vmem>>
    %48 = tpu.memref_squeeze %47 : memref<1x1x128xf32, #tpu.memory_space<vmem>> -> memref<1x128xf32, #tpu.memory_space<vmem>>
    %49 = tpu.memref_slice %arg7[%12, %c6_i32] : memref<2x8x!tpu.dma_semaphore, #tpu.memory_space<semaphore_mem>> -> memref<1x1x!tpu.dma_semaphore, #tpu.memory_space<semaphore_mem>>
    %50 = tpu.memref_squeeze %49 : memref<1x1x!tpu.dma_semaphore, #tpu.memory_space<semaphore_mem>> -> memref<!tpu.dma_semaphore, #tpu.memory_space<semaphore_mem>>
    tpu.wait_dma2 semaphore(%50 : memref<!tpu.dma_semaphore, #tpu.memory_space<semaphore_mem>>) src(%46 : memref<1x128xf32, #tpu.memory_space<any>>) dst(%48 : memref<1x128xf32, #tpu.memory_space<vmem>>)
    %c7_i32 = arith.constant 7 : i32
    %c0_i32_37 = arith.constant 0 : i32
    %c0_i32_38 = arith.constant 0 : i32
    %51 = tpu.memref_slice %arg4[%c0_i32_37, %c0_i32_38] : memref<64x128xf32, #tpu.memory_space<any>> -> memref<1x128xf32, #tpu.memory_space<any>>
    %c7_i32_39 = arith.constant 7 : i32
    %c0_i32_40 = arith.constant 0 : i32
    %52 = tpu.memref_slice %arg6[%12, %c7_i32_39, %c0_i32_40] : memref<2x8x128xf32, #tpu.memory_space<vmem>> -> memref<1x1x128xf32, #tpu.memory_space<vmem>>
    %53 = tpu.memref_squeeze %52 : memref<1x1x128xf32, #tpu.memory_space<vmem>> -> memref<1x128xf32, #tpu.memory_space<vmem>>
    %54 = tpu.memref_slice %arg7[%12, %c7_i32] : memref<2x8x!tpu.dma_semaphore, #tpu.memory_space<semaphore_mem>> -> memref<1x1x!tpu.dma_semaphore, #tpu.memory_space<semaphore_mem>>
    %55 = tpu.memref_squeeze %54 : memref<1x1x!tpu.dma_semaphore, #tpu.memory_space<semaphore_mem>> -> memref<!tpu.dma_semaphore, #tpu.memory_space<semaphore_mem>>
    tpu.wait_dma2 semaphore(%55 : memref<!tpu.dma_semaphore, #tpu.memory_space<semaphore_mem>>) src(%51 : memref<1x128xf32, #tpu.memory_space<any>>) dst(%53 : memref<1x128xf32, #tpu.memory_space<vmem>>)
    %c1_i32_41 = arith.constant 1 : i32
    %56 = arith.addi %arg1, %c1_i32_41 : i32
    %c2_i32_42 = arith.constant 2 : i32
    %57 = arith.cmpi slt, %56, %c2_i32_42 : i32
    %58 = arith.extui %57 : i1 to i32
    %c0_i32_43 = arith.constant 0 : i32
    %59 = arith.cmpi ne, %58, %c0_i32_43 : i32
    scf.if %59 {
      %c8_i32_48 = arith.constant 8 : i32
      %66 = arith.addi %2, %c8_i32_48 : i32
      %c1_i32_49 = arith.constant 1 : i32
      %67 = arith.subi %c1_i32_49, %12 : i32
      %c0_i32_50 = arith.constant 0 : i32
      %68 = arith.addi %66, %c0_i32_50 : i32
      %69 = arith.index_cast %68 : i32 to index
      %70 = memref.load %arg2[%69] : memref<32xi32, #tpu.memory_space<smem>>
      %c0_i32_51 = arith.constant 0 : i32
      %c0_i32_52 = arith.constant 0 : i32
      %71 = tpu.memref_slice %arg4[%70, %c0_i32_52] : memref<64x128xf32, #tpu.memory_space<any>> -> memref<1x128xf32, #tpu.memory_space<any>>
      %c0_i32_53 = arith.constant 0 : i32
      %c0_i32_54 = arith.constant 0 : i32
      %72 = tpu.memref_slice %arg6[%67, %c0_i32_53, %c0_i32_54] : memref<2x8x128xf32, #tpu.memory_space<vmem>> -> memref<1x1x128xf32, #tpu.memory_space<vmem>>
      %73 = tpu.memref_squeeze %72 : memref<1x1x128xf32, #tpu.memory_space<vmem>> -> memref<1x128xf32, #tpu.memory_space<vmem>>
      %74 = tpu.memref_slice %arg7[%67, %c0_i32_51] : memref<2x8x!tpu.dma_semaphore, #tpu.memory_space<semaphore_mem>> -> memref<1x1x!tpu.dma_semaphore, #tpu.memory_space<semaphore_mem>>
      %75 = tpu.memref_squeeze %74 : memref<1x1x!tpu.dma_semaphore, #tpu.memory_space<semaphore_mem>> -> memref<!tpu.dma_semaphore, #tpu.memory_space<semaphore_mem>>
      tpu.enqueue_dma source(%71 : memref<1x128xf32, #tpu.memory_space<any>>) target(%73 : memref<1x128xf32, #tpu.memory_space<vmem>>) target_semaphore(%75 : memref<!tpu.dma_semaphore, #tpu.memory_space<semaphore_mem>>)
      %c1_i32_55 = arith.constant 1 : i32
      %76 = arith.addi %66, %c1_i32_55 : i32
      %77 = arith.index_cast %76 : i32 to index
      %78 = memref.load %arg2[%77] : memref<32xi32, #tpu.memory_space<smem>>
      %c1_i32_56 = arith.constant 1 : i32
      %c0_i32_57 = arith.constant 0 : i32
      %79 = tpu.memref_slice %arg4[%78, %c0_i32_57] : memref<64x128xf32, #tpu.memory_space<any>> -> memref<1x128xf32, #tpu.memory_space<any>>
      %c1_i32_58 = arith.constant 1 : i32
      %c0_i32_59 = arith.constant 0 : i32
      %80 = tpu.memref_slice %arg6[%67, %c1_i32_58, %c0_i32_59] : memref<2x8x128xf32, #tpu.memory_space<vmem>> -> memref<1x1x128xf32, #tpu.memory_space<vmem>>
      %81 = tpu.memref_squeeze %80 : memref<1x1x128xf32, #tpu.memory_space<vmem>> -> memref<1x128xf32, #tpu.memory_space<vmem>>
      %82 = tpu.memref_slice %arg7[%67, %c1_i32_56] : memref<2x8x!tpu.dma_semaphore, #tpu.memory_space<semaphore_mem>> -> memref<1x1x!tpu.dma_semaphore, #tpu.memory_space<semaphore_mem>>
      %83 = tpu.memref_squeeze %82 : memref<1x1x!tpu.dma_semaphore, #tpu.memory_space<semaphore_mem>> -> memref<!tpu.dma_semaphore, #tpu.memory_space<semaphore_mem>>
      tpu.enqueue_dma source(%79 : memref<1x128xf32, #tpu.memory_space<any>>) target(%81 : memref<1x128xf32, #tpu.memory_space<vmem>>) target_semaphore(%83 : memref<!tpu.dma_semaphore, #tpu.memory_space<semaphore_mem>>)
      %c2_i32_60 = arith.constant 2 : i32
      %84 = arith.addi %66, %c2_i32_60 : i32
      %85 = arith.index_cast %84 : i32 to index
      %86 = memref.load %arg2[%85] : memref<32xi32, #tpu.memory_space<smem>>
      %c2_i32_61 = arith.constant 2 : i32
      %c0_i32_62 = arith.constant 0 : i32
      %87 = tpu.memref_slice %arg4[%86, %c0_i32_62] : memref<64x128xf32, #tpu.memory_space<any>> -> memref<1x128xf32, #tpu.memory_space<any>>
      %c2_i32_63 = arith.constant 2 : i32
      %c0_i32_64 = arith.constant 0 : i32
      %88 = tpu.memref_slice %arg6[%67, %c2_i32_63, %c0_i32_64] : memref<2x8x128xf32, #tpu.memory_space<vmem>> -> memref<1x1x128xf32, #tpu.memory_space<vmem>>
      %89 = tpu.memref_squeeze %88 : memref<1x1x128xf32, #tpu.memory_space<vmem>> -> memref<1x128xf32, #tpu.memory_space<vmem>>
      %90 = tpu.memref_slice %arg7[%67, %c2_i32_61] : memref<2x8x!tpu.dma_semaphore, #tpu.memory_space<semaphore_mem>> -> memref<1x1x!tpu.dma_semaphore, #tpu.memory_space<semaphore_mem>>
      %91 = tpu.memref_squeeze %90 : memref<1x1x!tpu.dma_semaphore, #tpu.memory_space<semaphore_mem>> -> memref<!tpu.dma_semaphore, #tpu.memory_space<semaphore_mem>>
      tpu.enqueue_dma source(%87 : memref<1x128xf32, #tpu.memory_space<any>>) target(%89 : memref<1x128xf32, #tpu.memory_space<vmem>>) target_semaphore(%91 : memref<!tpu.dma_semaphore, #tpu.memory_space<semaphore_mem>>)
      %c3_i32_65 = arith.constant 3 : i32
      %92 = arith.addi %66, %c3_i32_65 : i32
      %93 = arith.index_cast %92 : i32 to index
      %94 = memref.load %arg2[%93] : memref<32xi32, #tpu.memory_space<smem>>
      %c3_i32_66 = arith.constant 3 : i32
      %c0_i32_67 = arith.constant 0 : i32
      %95 = tpu.memref_slice %arg4[%94, %c0_i32_67] : memref<64x128xf32, #tpu.memory_space<any>> -> memref<1x128xf32, #tpu.memory_space<any>>
      %c3_i32_68 = arith.constant 3 : i32
      %c0_i32_69 = arith.constant 0 : i32
      %96 = tpu.memref_slice %arg6[%67, %c3_i32_68, %c0_i32_69] : memref<2x8x128xf32, #tpu.memory_space<vmem>> -> memref<1x1x128xf32, #tpu.memory_space<vmem>>
      %97 = tpu.memref_squeeze %96 : memref<1x1x128xf32, #tpu.memory_space<vmem>> -> memref<1x128xf32, #tpu.memory_space<vmem>>
      %98 = tpu.memref_slice %arg7[%67, %c3_i32_66] : memref<2x8x!tpu.dma_semaphore, #tpu.memory_space<semaphore_mem>> -> memref<1x1x!tpu.dma_semaphore, #tpu.memory_space<semaphore_mem>>
      %99 = tpu.memref_squeeze %98 : memref<1x1x!tpu.dma_semaphore, #tpu.memory_space<semaphore_mem>> -> memref<!tpu.dma_semaphore, #tpu.memory_space<semaphore_mem>>
      tpu.enqueue_dma source(%95 : memref<1x128xf32, #tpu.memory_space<any>>) target(%97 : memref<1x128xf32, #tpu.memory_space<vmem>>) target_semaphore(%99 : memref<!tpu.dma_semaphore, #tpu.memory_space<semaphore_mem>>)
      %c4_i32_70 = arith.constant 4 : i32
      %100 = arith.addi %66, %c4_i32_70 : i32
      %101 = arith.index_cast %100 : i32 to index
      %102 = memref.load %arg2[%101] : memref<32xi32, #tpu.memory_space<smem>>
      %c4_i32_71 = arith.constant 4 : i32
      %c0_i32_72 = arith.constant 0 : i32
      %103 = tpu.memref_slice %arg4[%102, %c0_i32_72] : memref<64x128xf32, #tpu.memory_space<any>> -> memref<1x128xf32, #tpu.memory_space<any>>
      %c4_i32_73 = arith.constant 4 : i32
      %c0_i32_74 = arith.constant 0 : i32
      %104 = tpu.memref_slice %arg6[%67, %c4_i32_73, %c0_i32_74] : memref<2x8x128xf32, #tpu.memory_space<vmem>> -> memref<1x1x128xf32, #tpu.memory_space<vmem>>
      %105 = tpu.memref_squeeze %104 : memref<1x1x128xf32, #tpu.memory_space<vmem>> -> memref<1x128xf32, #tpu.memory_space<vmem>>
      %106 = tpu.memref_slice %arg7[%67, %c4_i32_71] : memref<2x8x!tpu.dma_semaphore, #tpu.memory_space<semaphore_mem>> -> memref<1x1x!tpu.dma_semaphore, #tpu.memory_space<semaphore_mem>>
      %107 = tpu.memref_squeeze %106 : memref<1x1x!tpu.dma_semaphore, #tpu.memory_space<semaphore_mem>> -> memref<!tpu.dma_semaphore, #tpu.memory_space<semaphore_mem>>
      tpu.enqueue_dma source(%103 : memref<1x128xf32, #tpu.memory_space<any>>) target(%105 : memref<1x128xf32, #tpu.memory_space<vmem>>) target_semaphore(%107 : memref<!tpu.dma_semaphore, #tpu.memory_space<semaphore_mem>>)
      %c5_i32_75 = arith.constant 5 : i32
      %108 = arith.addi %66, %c5_i32_75 : i32
      %109 = arith.index_cast %108 : i32 to index
      %110 = memref.load %arg2[%109] : memref<32xi32, #tpu.memory_space<smem>>
      %c5_i32_76 = arith.constant 5 : i32
      %c0_i32_77 = arith.constant 0 : i32
      %111 = tpu.memref_slice %arg4[%110, %c0_i32_77] : memref<64x128xf32, #tpu.memory_space<any>> -> memref<1x128xf32, #tpu.memory_space<any>>
      %c5_i32_78 = arith.constant 5 : i32
      %c0_i32_79 = arith.constant 0 : i32
      %112 = tpu.memref_slice %arg6[%67, %c5_i32_78, %c0_i32_79] : memref<2x8x128xf32, #tpu.memory_space<vmem>> -> memref<1x1x128xf32, #tpu.memory_space<vmem>>
      %113 = tpu.memref_squeeze %112 : memref<1x1x128xf32, #tpu.memory_space<vmem>> -> memref<1x128xf32, #tpu.memory_space<vmem>>
      %114 = tpu.memref_slice %arg7[%67, %c5_i32_76] : memref<2x8x!tpu.dma_semaphore, #tpu.memory_space<semaphore_mem>> -> memref<1x1x!tpu.dma_semaphore, #tpu.memory_space<semaphore_mem>>
      %115 = tpu.memref_squeeze %114 : memref<1x1x!tpu.dma_semaphore, #tpu.memory_space<semaphore_mem>> -> memref<!tpu.dma_semaphore, #tpu.memory_space<semaphore_mem>>
      tpu.enqueue_dma source(%111 : memref<1x128xf32, #tpu.memory_space<any>>) target(%113 : memref<1x128xf32, #tpu.memory_space<vmem>>) target_semaphore(%115 : memref<!tpu.dma_semaphore, #tpu.memory_space<semaphore_mem>>)
      %c6_i32_80 = arith.constant 6 : i32
      %116 = arith.addi %66, %c6_i32_80 : i32
      %117 = arith.index_cast %116 : i32 to index
      %118 = memref.load %arg2[%117] : memref<32xi32, #tpu.memory_space<smem>>
      %c6_i32_81 = arith.constant 6 : i32
      %c0_i32_82 = arith.constant 0 : i32
      %119 = tpu.memref_slice %arg4[%118, %c0_i32_82] : memref<64x128xf32, #tpu.memory_space<any>> -> memref<1x128xf32, #tpu.memory_space<any>>
      %c6_i32_83 = arith.constant 6 : i32
      %c0_i32_84 = arith.constant 0 : i32
      %120 = tpu.memref_slice %arg6[%67, %c6_i32_83, %c0_i32_84] : memref<2x8x128xf32, #tpu.memory_space<vmem>> -> memref<1x1x128xf32, #tpu.memory_space<vmem>>
      %121 = tpu.memref_squeeze %120 : memref<1x1x128xf32, #tpu.memory_space<vmem>> -> memref<1x128xf32, #tpu.memory_space<vmem>>
      %122 = tpu.memref_slice %arg7[%67, %c6_i32_81] : memref<2x8x!tpu.dma_semaphore, #tpu.memory_space<semaphore_mem>> -> memref<1x1x!tpu.dma_semaphore, #tpu.memory_space<semaphore_mem>>
      %123 = tpu.memref_squeeze %122 : memref<1x1x!tpu.dma_semaphore, #tpu.memory_space<semaphore_mem>> -> memref<!tpu.dma_semaphore, #tpu.memory_space<semaphore_mem>>
      tpu.enqueue_dma source(%119 : memref<1x128xf32, #tpu.memory_space<any>>) target(%121 : memref<1x128xf32, #tpu.memory_space<vmem>>) target_semaphore(%123 : memref<!tpu.dma_semaphore, #tpu.memory_space<semaphore_mem>>)
      %c7_i32_85 = arith.constant 7 : i32
      %124 = arith.addi %66, %c7_i32_85 : i32
      %125 = arith.index_cast %124 : i32 to index
      %126 = memref.load %arg2[%125] : memref<32xi32, #tpu.memory_space<smem>>
      %c7_i32_86 = arith.constant 7 : i32
      %c0_i32_87 = arith.constant 0 : i32
      %127 = tpu.memref_slice %arg4[%126, %c0_i32_87] : memref<64x128xf32, #tpu.memory_space<any>> -> memref<1x128xf32, #tpu.memory_space<any>>
      %c7_i32_88 = arith.constant 7 : i32
      %c0_i32_89 = arith.constant 0 : i32
      %128 = tpu.memref_slice %arg6[%67, %c7_i32_88, %c0_i32_89] : memref<2x8x128xf32, #tpu.memory_space<vmem>> -> memref<1x1x128xf32, #tpu.memory_space<vmem>>
      %129 = tpu.memref_squeeze %128 : memref<1x1x128xf32, #tpu.memory_space<vmem>> -> memref<1x128xf32, #tpu.memory_space<vmem>>
      %130 = tpu.memref_slice %arg7[%67, %c7_i32_86] : memref<2x8x!tpu.dma_semaphore, #tpu.memory_space<semaphore_mem>> -> memref<1x1x!tpu.dma_semaphore, #tpu.memory_space<semaphore_mem>>
      %131 = tpu.memref_squeeze %130 : memref<1x1x!tpu.dma_semaphore, #tpu.memory_space<semaphore_mem>> -> memref<!tpu.dma_semaphore, #tpu.memory_space<semaphore_mem>>
      tpu.enqueue_dma source(%127 : memref<1x128xf32, #tpu.memory_space<any>>) target(%129 : memref<1x128xf32, #tpu.memory_space<vmem>>) target_semaphore(%131 : memref<!tpu.dma_semaphore, #tpu.memory_space<semaphore_mem>>)
    } else {
    }
    %60 = arith.index_cast %12 : i32 to index
    %c0 = arith.constant 0 : index
    %c0_44 = arith.constant 0 : index
    %61 = vector.load %arg6[%60, %c0, %c0_44] : memref<2x8x128xf32, #tpu.memory_space<vmem>>, vector<1x8x128xf32>
    %62 = vector.shape_cast %61 : vector<1x8x128xf32> to vector<8x128xf32>
    %c0_45 = arith.constant 0 : index
    %c0_46 = arith.constant 0 : index
    %c0_47 = arith.constant 0 : index
    %63 = vector.load %arg5[%c0_45, %c0_46, %c0_47] : memref<1x8x128xf32, #tpu.memory_space<vmem>>, vector<1x8x128xf32>
    %64 = vector.shape_cast %63 : vector<1x8x128xf32> to vector<8x128xf32>
    %65 = vector.shape_cast %62 : vector<8x128xf32> to vector<1x8x128xf32>
    tpu.vector_store %arg5[%c0_45, %c0_46, %c0_47], %65 {strides = array<i32>} : memref<1x8x128xf32, #tpu.memory_space<vmem>>, vector<1x8x128xf32>,
    return
  }
  func.func @transform_1(%arg0: i32, %arg1: i32, %arg2: memref<32xi32, #tpu.memory_space<smem>>, %arg3: memref<2xi32, #tpu.memory_space<smem>>) -> (i32, i32, i32) {
    %c0_i32 = arith.constant 0 : i32
    %c0_i32_0 = arith.constant 0 : i32
    return %arg0, %arg1, %c0_i32 : i32, i32, i32
  }
}

</mosaic_0001>

<bundles_post_ra>
// kernel: tpu_custom_call.1
= control target key start
LH: loop header
LB: loop body
LE: loop exit
PB: predicated region body
PF: predicated region fallthrough
CT: control target
= control target key end

     0   :  { %s2183_s0 = inlined_call_operand.hbm [shape: s32[32], index: 0, kind: input, shape index: {}]   ;;  %s2184_s2 = inlined_call_operand.hbm [shape: f32[64,128], index: 2, kind: input, shape index: {}]   ;;  %s2185_s3 = inlined_call_operand.hbm [shape: f32[2,16,128], index: 3, kind: output, shape index: {}]   ;;  %s2186_s1 = inlined_call_operand.vmem [shape: s32[2], index: 1, kind: input, shape index: {}]  }
   0x1   :  { %2201 = sst [smem:[#allocation79_spill]] %s2185_s3  ;;  %s931_s14 = scalar_lea.hbm %s2183_s0, 16 }
   0x2   :  { %p932_p0 = scmp.ne.s32.totalorder %s2183_s0, %s931_s14  ;;  %p935_p1 = scmp.lt.u32.totalorder %s931_s14, %s2183_s0 }
   0x4   :  { %p937_p2 = pnand %p935_p1, %p932_p0 }
   0x6   :  { %940 = shalt.err (!%p937_p2)  }
   0x7   :  { %s1491_s19 = smov [#allocation5]   ;;  %s10_s24 = sshll.u32 %s2186_s1, 4  ;;  %s11_s24 = int_to_ptr.vmem [resolvable:$true] %s10_s24 }
   0x8   :  { %9 = dma.hbm_to_smem %s2183_s0, 16, %s1491_s19, [#allocation4] }
   0x9   :  { %s941_s25 = scalar_lea.vmem %s11_s24, 16  ;;  %p946_p4 = scmp.lt.s32.totalorder %s11_s24, %s11_s24 }
   0xa   :  { %p942_p3 = scmp.ne.s32.totalorder %s11_s24, %s941_s25  ;;  %p947_p5 = scmp.lt.s32.totalorder %s941_s25, %s941_s25 }
   0xc   :  { %p948_p6 = por %p947_p5, %p946_p4 }
   0xe   :  { %p949_p7 = pnand %p948_p6, %p942_p3 }
  0x10   :  { %952 = shalt.err (!%p949_p7)  }
  0x11   :  { %s1492_s26 = smov [#allocation6]  }
  0x12   :  { %13 = dma.vmem_to_smem %s11_s24, 16, %s1492_s26, [#allocation4] }
  0x13   :  { %1449 = dma.done.wait [#allocation4], 32 }
  0x14   :  { %1450 = vsyncadd [#allocation4], 4294967264 }
  0x15   :  { %15 = sfence }
  0x16   :  { %16 = vsyncpa [#allocation8], 0 }
  0x17   :  { %18 = vsyncpa [#allocation8 + $0x1], 0  ;;  %s1530_s0 = smov 0   ;;  %s1532_s27 = smov 0  }
  0x18   :  { %s1534_s1 = smov 0   ;;  %s1536_s28 = smov 0  }
  0x19   :  { %s1538_s29 = smov 0  }
  0x1a LB: > { %2202 = sst [smem:[#allocation69_spill]] %s1473_s0  ;;  %s1554_s30 = sadd.s32 1, %s1481_s1  ;;  %s1489_s29 = sphi %s1538_s29, %s24_s29   ;;  %s1485_s28 = sphi %s1536_s28, %s2232_s28   ;;  %s1481_s1 = sphi %s1534_s1, %s2231_s1   ;;  %s1477_s27 = sphi %s1532_s27, %s2230_s27   ;;  %s1473_s0 = sphi %s1530_s0, %s2229_s0  }
  0x1b   : > { %2203 = sst [smem:[#allocation70_spill]] %s1477_s27  ;;  %p31_p8 = scmp.ge.s32.totalorder %s1554_s30, 2 }
  0x1c   : > { %2204 = sst [smem:[#allocation71_spill]] %s1489_s29  ;;  %s33_s4 = sadd.s32 1, %s1485_s28 }
  0x1d   : > { %s744_s5 = sadd.s32 4294967295, %s1489_s29   ;;  %s2234_s4 = smov (!%p31_p8, %s33_s4), %s1485_s28 }
  0x1e   : > { %s1559_s6 = scalar_select %p31_p8, 0, %s1554_s30  }
  0x1f   : > { %p51_p9 = scmp.ne.s32.totalorder %s1477_s27, %s1473_s0  ;;  %p35_p10 = scmp.ge.s32.totalorder %s2234_s4, 2 }
  0x20   : > { %2205 = sst [smem:[#allocation72_spill]] %s1559_s6  ;;  %p52_p11 = scmp.eq.s32.totalorder %s744_s5, 3 }
  0x21   : > { %s38_s7 = ssub.s32 %s1481_s1, %s1559_s6  ;;  %s2236_s4 = smov (%p35_p10, %s2234_s4), 0 }
  0x22   : > { %2206 = sst [smem:[#allocation73_spill]] %s2236_s4  ;;  %p1567_p12 = por %p52_p11, %p51_p9 }
  0x23   : > { %s37_s9 = ssub.s32 %s1485_s28, %s2236_s4  ;;  %s42_s10 = sadd.s32 1, %s1477_s27 }
  0x24   : > { %s2207_s8 = scalar_select %p1567_p12, 1, 0 }
  0x25   : > { %s39_s11 = sor.u32 %s38_s7, %s37_s9  ;;  %p46_p13 = scmp.eq.s32.totalorder %s1489_s29, 3 }
  0x26   : > { %2208 = sst [smem:[#allocation74_spill]] %s2207_s8  ;;  %p40_p0 = scmp.eq.s32.totalorder %s39_s11, 0 }
  0x27   : > { %p745_p1 = scmp.ne.s32.totalorder %s39_s11, 0  ;;  %p746_p3 = scmp.ge.s32.totalorder %s1489_s29, 4 }
  0x28   : > { %s1575_s12 = scalar_select %p40_p0, %s1477_s27, %s42_s10  }
  0x29   : > { %p1577_p2 = por %p745_p1, %p46_p13  ;;  %61 = sbr.rel (%p746_p3) target bundleno = 533 (0x215), region = 12 }
  0x2a   : > { %2209 = sst [smem:[#allocation75_spill]] %s1575_s12 }
  0x2b   : > { %s2210_s13 = scalar_select %p1577_p2, 1, 0 }
  0x2d   : > { %2211 = sst [smem:[#allocation76_spill]] %s2210_s13 }
  0x30   : > { %s2187_s14 = sand.u32 1, %s1477_s27   ;;  %s748_s15 = sshll.u32 %s1485_s28, 1 }
  0x31   : > { %s1585_s16 = sshll.u32 %s2187_s14, 3  ;;  %s1588_s17 = sadd.s32 %s1481_s1, %s748_s15 }
  0x32   : > { %2212 = sst [smem:[#allocation77_spill]] %s1588_s17  ;;  %s1591_s18 = sshll.u32 %s1588_s17, 3 }
  0x33   : > { %s73_s19 = ssub.s32 0, %s1481_s1  ;;  %p886_p4 = scmp.eq.s32.totalorder %s1481_s1, 0 }
  0x34   : > { %s750_s20 = smin.u32 %s1481_s1, %s73_s19  ;;  %s1632_s4 = scalar_lea.hbm %s2184_s2, 1024 }
  0x35   : > { %s75_s21 = sand.u32 1, %s750_s20  }
  0x36   : > { %s831_s23 = scalar_select %p886_p4, [#allocation5], [#allocation43] }
  0x37   : > { %p752_p5 = scmp.lt.s32.totalorder %s75_s21, 0  ;;  %s82_s24 = sadd.s32 2, %s75_s21 }
  0x38   : > { %s832_s25 = scalar_select %p886_p4, %s1591_s18, 0 }
  0x39   : > { %s2238_s24 = smov (!%p752_p5, %s82_s24), %s75_s21 }
  0x3a   : > { %2213 = sst [smem:[#allocation78_spill]] %s2238_s24  ;;  %s755_s5 = sshll.u32 %s2238_s24, 3 }
  0x3b   : > { %s88_s26 = sld [smem:[%s831_s23 + %s832_s25]]  ;;  %s1607_s9 = scalar_lea.vmem [#allocation2], %s755_s5 }
  0x3c   : > { %s101_s10 = sshll.u32 %s1607_s9, 4  ;;  %s578_s11 = scalar_lea.vmem %s1607_s9, 1 [#allocation2]  ;;  %s1611_s10 = int_to_ptr.vmem [resolvable:$true] %s101_s10 }
  0x3d   : > { %s1613_s15 = scalar_lea.sflag [#allocation3], %s755_s5  ;;  %s119_s23 = sshll.u32 %s578_s11, 4  ;;  %s1625_s23 = int_to_ptr.vmem [resolvable:$true] %s119_s23 }
  0x3e   : > { %s1616_s19 = scalar_lea.sflag %s1613_s15, 1 [#allocation3] }
  0x3f   : > { %s1620_s20 = scalar_select %p886_p4, [#allocation5], [#allocation44] }
  0x41   : > { %s754_s21 = sshll.u32 %s88_s26, 4 }
  0x42   : > { %s90_s7 = scalar_lea.hbm %s2184_s2, %s754_s21 }
  0x43   : > { %s953_s28 = scalar_lea.hbm %s90_s7, 16  ;;  %p958_p9 = scmp.lt.u32.totalorder %s90_s7, %s2184_s2 }
  0x44   : > { %p954_p6 = scmp.ne.s32.totalorder %s90_s7, %s953_s28  ;;  %p959_p10 = scmp.lt.u32.totalorder %s1632_s4, %s953_s28 }
  0x45   : > { %p961_p13 = scmp.lt.u32.totalorder %s953_s28, %s90_s7 }
  0x46   : > { %p955_p7 = pnand %p954_p6, %p886_p4  ;;  %p960_p11 = por %p959_p10, %p958_p9 }
  0x48   : > { %p956_p8 = pneg %p955_p7  ;;  %p962_p0 = por %p961_p13, %p960_p11 }
  0x4a   : > { %p963_p1 = pnand %p962_p0, %p956_p8 }
  0x4c   : > { %966 = shalt.err (!%p963_p1)  }
  0x4d   : > { %s967_s14 = scalar_lea.vmem %s1611_s10, 16  ;;  %s1493_s22 = smov [#allocation2]  }
  0x4e   : > { %p968_p3 = scmp.ne.s32.totalorder %s1611_s10, %s967_s14  ;;  %s971_s26 = sshll.u32 %s1493_s22, 4  ;;  %s1642_s26 = int_to_ptr.vmem [resolvable:$false] %s971_s26 }
  0x4f   : > { %s1645_s6 = scalar_lea.vmem %s1642_s26, 256  ;;  %p974_p7 = scmp.lt.s32.totalorder %s1611_s10, %s1642_s26 }
  0x50   : > { %p969_p5 = pnand %p968_p3, %p886_p4  ;;  %p975_p8 = scmp.lt.s32.totalorder %s1645_s6, %s967_s14 }
  0x52   : > { %p970_p6 = pneg %p969_p5  ;;  %p976_p9 = por %p975_p8, %p974_p7 }
  0x54   : > { %p977_p10 = pnand %p976_p9, %p970_p6 }
  0x56   : > { %980 = shalt.err (!%p977_p10)  }
  0x57   : > { %833 = dma.hbm_to_vmem [thread:$0]  (%p886_p4), %s90_s7, 16, %s1611_s10, %s1613_s15 }
  0x58   : > { %s2214_s12 = sadd.s32 1, %s1591_s18  ;;  %s586_s21 = scalar_lea.vmem %s1607_s9, 2 [#allocation2] }
  0x59   : > { %s2240_s12 = smov (!%p886_p4, %s2214_s12), 0  ;;  %s2215_s25 = sadd.s32 2, %s1591_s18 }
  0x5a   : > { %s837_s28 = scalar_select %p886_p4, [#allocation5], [#allocation45] }
  0x5b   : > { %s106_s11 = sld [smem:[%s1620_s20 + %s2240_s12]]  ;;  %s2242_s25 = smov (!%p886_p4, %s2215_s25), 0 }
  0x5c   : > { %s1667_s5 = scalar_lea.sflag %s1613_s15, 2 [#allocation3]  ;;  %s137_s14 = sshll.u32 %s586_s21, 4  ;;  %s1671_s14 = int_to_ptr.vmem [resolvable:$true] %s137_s14 }
  0x5d   : > { %s1669_s22 = sld [smem:[%s837_s28 + %s2242_s25]]  ;;  %s2216_s10 = sadd.s32 3, %s1591_s18 }
  0x5e   : > { %s840_s7 = scalar_select %p886_p4, [#allocation5], [#allocation46] }
  0x5f   : > { %s2244_s10 = smov (!%p886_p4, %s2216_s10), 0  ;;  %s594_s0 = scalar_lea.vmem %s1607_s9, 3 [#allocation2] }
  0x60   : > { %s1683_s3 = sld [smem:[%s840_s7 + %s2244_s10]] }
  0x61   : > { %s756_s8 = sshll.u32 %s106_s11, 4 }
  0x62   : > { %s108_s29 = scalar_lea.hbm %s2184_s2, %s756_s8 }
  0x63   : > { %s981_s13 = scalar_lea.hbm %s108_s29, 16  ;;  %p986_p1 = scmp.lt.u32.totalorder %s108_s29, %s2184_s2 }
  0x64   : > { %p982_p11 = scmp.ne.s32.totalorder %s108_s29, %s981_s13  ;;  %p987_p3 = scmp.lt.u32.totalorder %s1632_s4, %s981_s13 }
  0x65   : > { %p989_p6 = scmp.lt.u32.totalorder %s981_s13, %s108_s29 }
  0x66   : > { %p983_p13 = pnand %p982_p11, %p886_p4  ;;  %p988_p5 = por %p987_p3, %p986_p1 }
  0x68   : > { %p984_p0 = pneg %p983_p13  ;;  %p990_p7 = por %p989_p6, %p988_p5 }
  0x6a   : > { %p991_p8 = pnand %p990_p7, %p984_p0 }
  0x6c   : > { %994 = shalt.err (!%p991_p8)  }
  0x6d   : > { %s995_s8 = scalar_lea.vmem %s1625_s23, 16  ;;  %p1002_p13 = scmp.lt.s32.totalorder %s1625_s23, %s1642_s26 }
  0x6e   : > { %p996_p9 = scmp.ne.s32.totalorder %s1625_s23, %s995_s8  ;;  %p1003_p12 = scmp.lt.s32.totalorder %s1645_s6, %s995_s8 }
  0x70   : > { %p997_p10 = pnand %p996_p9, %p886_p4  ;;  %p1004_p2 = por %p1003_p12, %p1002_p13 }
  0x72   : > { %p998_p11 = pneg %p997_p10 }
  0x74   : > { %p1005_p1 = pnand %p1004_p2, %p998_p11 }
  0x76   : > { %1008 = shalt.err (!%p1005_p1)  }
  0x77   : > { %836 = dma.hbm_to_vmem [thread:$0]  (%p886_p4), %s108_s29, 16, %s1625_s23, %s1616_s19 }
  0x78   : > { %s759_s13 = sshll.u32 %s1669_s22, 4  ;;  %s155_s10 = sshll.u32 %s594_s0, 4  ;;  %s156_s10 = int_to_ptr.vmem [resolvable:$true] %s155_s10 }
  0x79   : > { %s126_s7 = scalar_lea.hbm %s2184_s2, %s759_s13 }
  0x7a   : > { %s1009_s20 = scalar_lea.hbm %s126_s7, 16  ;;  %p1014_p3 = scmp.lt.u32.totalorder %s126_s7, %s2184_s2 }
  0x7b   : > { %p1010_p0 = scmp.ne.s32.totalorder %s126_s7, %s1009_s20  ;;  %p1015_p5 = scmp.lt.u32.totalorder %s1632_s4, %s1009_s20 }
  0x7c   : > { %p1017_p7 = scmp.lt.u32.totalorder %s1009_s20, %s126_s7 }
  0x7d   : > { %p1011_p12 = pnand %p1010_p0, %p886_p4  ;;  %p1016_p6 = por %p1015_p5, %p1014_p3 }
  0x7f   : > { %p1012_p2 = pneg %p1011_p12  ;;  %p1018_p8 = por %p1017_p7, %p1016_p6 }
  0x81   : > { %p1019_p9 = pnand %p1018_p8, %p1012_p2 }
  0x83   : > { %1022 = shalt.err (!%p1019_p9)  }
  0x84   : > { %s1023_s0 = scalar_lea.vmem %s1671_s14, 16  ;;  %p1030_p1 = scmp.lt.s32.totalorder %s1671_s14, %s1642_s26 }
  0x85   : > { %p1024_p10 = scmp.ne.s32.totalorder %s1671_s14, %s1023_s0  ;;  %p1031_p0 = scmp.lt.s32.totalorder %s1645_s6, %s1023_s0 }
  0x87   : > { %p1025_p11 = pnand %p1024_p10, %p886_p4  ;;  %p1032_p12 = por %p1031_p0, %p1030_p1 }
  0x89   : > { %p1026_p13 = pneg %p1025_p11 }
  0x8b   : > { %p1033_p3 = pnand %p1032_p12, %p1026_p13 }
  0x8d   : > { %1036 = shalt.err (!%p1033_p3)  }
  0x8e   : > { %839 = dma.hbm_to_vmem [thread:$0]  (%p886_p4), %s126_s7, 16, %s1671_s14, %s1667_s5 }
  0x8f   : > { %s1724_s29 = scalar_lea.sflag %s1613_s15, 3 [#allocation3]  ;;  %s762_s23 = sshll.u32 %s1683_s3, 4 }
  0x90   : > { %s159_s22 = sadd.s32 4, %s1591_s18  ;;  %s144_s13 = scalar_lea.hbm %s2184_s2, %s762_s23 }
  0x91   : > { %s602_s11 = scalar_lea.vmem %s1607_s9, 4 [#allocation2]  ;;  %s1037_s25 = scalar_lea.hbm %s144_s13, 16 }
  0x92   : > { %p1038_p2 = scmp.ne.s32.totalorder %s144_s13, %s1037_s25  ;;  %p1042_p7 = scmp.lt.u32.totalorder %s144_s13, %s2184_s2 }
  0x93   : > { %p1043_p8 = scmp.lt.u32.totalorder %s1632_s4, %s1037_s25  ;;  %p1045_p10 = scmp.lt.u32.totalorder %s1037_s25, %s144_s13 }
  0x94   : > { %p1039_p5 = pnand %p1038_p2, %p886_p4 }
  0x95   : > { %p1044_p9 = por %p1043_p8, %p1042_p7 }
  0x96   : > { %p1040_p6 = pneg %p1039_p5 }
  0x97   : > { %p1046_p11 = por %p1045_p10, %p1044_p9 }
  0x99   : > { %p1047_p13 = pnand %p1046_p11, %p1040_p6 }
  0x9b   : > { %1050 = shalt.err (!%p1047_p13)  }
  0x9c   : > { %s1051_s3 = scalar_lea.vmem %s156_s10, 16  ;;  %p1058_p3 = scmp.lt.s32.totalorder %s156_s10, %s1642_s26 }
  0x9d   : > { %p1052_p1 = scmp.ne.s32.totalorder %s156_s10, %s1051_s3  ;;  %p1059_p2 = scmp.lt.s32.totalorder %s1645_s6, %s1051_s3 }
  0x9f   : > { %p1053_p0 = pnand %p1052_p1, %p886_p4  ;;  %p1060_p5 = por %p1059_p2, %p1058_p3 }
  0xa1   : > { %p1054_p12 = pneg %p1053_p0 }
  0xa3   : > { %p1061_p7 = pnand %p1060_p5, %p1054_p12 }
  0xa5   : > { %1064 = shalt.err (!%p1061_p7)  }
  0xa6   : > { %842 = dma.hbm_to_vmem [thread:$0]  (%p886_p4), %s144_s13, 16, %s156_s10, %s1724_s29 }
  0xa7   : > { %s843_s14 = scalar_select %p886_p4, [#allocation5], [#allocation47] }
  0xa8   : > { %s2246_s22 = smov (!%p886_p4, %s159_s22), 0  ;;  %s177_s7 = sadd.s32 5, %s1591_s18 }
  0xa9   : > { %s160_s28 = sld [smem:[%s843_s14 + %s2246_s22]]  ;;  %s173_s0 = sshll.u32 %s602_s11, 4  ;;  %s174_s0 = int_to_ptr.vmem [resolvable:$true] %s173_s0 }
  0xaa   : > { %s846_s23 = scalar_select %p886_p4, [#allocation5], [#allocation48] }
  0xab   : > { %s2248_s7 = smov (!%p886_p4, %s177_s7), 0  ;;  %s610_s21 = scalar_lea.vmem %s1607_s9, 5 [#allocation2] }
  0xac   : > { %s1755_s8 = sld [smem:[%s846_s23 + %s2248_s7]]  ;;  %s191_s25 = sshll.u32 %s610_s21, 4  ;;  %s1766_s25 = int_to_ptr.vmem [resolvable:$true] %s191_s25 }
  0xad   : > { %s1758_s20 = scalar_lea.sflag %s1613_s15, 4 [#allocation3]  ;;  %s1761_s13 = scalar_lea.sflag %s1613_s15, 5 [#allocation3] }
  0xaf   : > { %s765_s10 = sshll.u32 %s160_s28, 4 }
  0xb0   : > { %s162_s22 = scalar_lea.hbm %s2184_s2, %s765_s10 }
  0xb1   : > { %s1065_s11 = scalar_lea.hbm %s162_s22, 16  ;;  %p1070_p10 = scmp.lt.u32.totalorder %s162_s22, %s2184_s2 }
  0xb2   : > { %p1066_p6 = scmp.ne.s32.totalorder %s162_s22, %s1065_s11  ;;  %p1071_p11 = scmp.lt.u32.totalorder %s1632_s4, %s1065_s11 }
  0xb3   : > { %p1073_p1 = scmp.lt.u32.totalorder %s1065_s11, %s162_s22 }
  0xb4   : > { %p1067_p8 = pnand %p1066_p6, %p886_p4  ;;  %p1072_p13 = por %p1071_p11, %p1070_p10 }
  0xb6   : > { %p1068_p9 = pneg %p1067_p8  ;;  %p1074_p0 = por %p1073_p1, %p1072_p13 }
  0xb8   : > { %p1075_p12 = pnand %p1074_p0, %p1068_p9 }
  0xba   : > { %1078 = shalt.err (!%p1075_p12)  }
  0xbb   : > { %s1079_s28 = scalar_lea.vmem %s174_s0, 16  ;;  %p1086_p7 = scmp.lt.s32.totalorder %s174_s0, %s1642_s26 }
  0xbc   : > { %p1080_p3 = scmp.ne.s32.totalorder %s174_s0, %s1079_s28  ;;  %p1087_p6 = scmp.lt.s32.totalorder %s1645_s6, %s1079_s28 }
  0xbe   : > { %p1081_p2 = pnand %p1080_p3, %p886_p4  ;;  %p1088_p8 = por %p1087_p6, %p1086_p7 }
  0xc0   : > { %p1082_p5 = pneg %p1081_p2 }
  0xc2   : > { %p1089_p10 = pnand %p1088_p8, %p1082_p5 }
  0xc4   : > { %1092 = shalt.err (!%p1089_p10)  }
  0xc5   : > { %845 = dma.hbm_to_vmem [thread:$0]  (%p886_p4), %s162_s22, 16, %s174_s0, %s1758_s20 }
  0xc6   : > { %s849_s23 = scalar_select %p886_p4, [#allocation5], [#allocation49] }
  0xc7   : > { %s768_s21 = sshll.u32 %s1755_s8, 4  ;;  %s195_s10 = sadd.s32 6, %s1591_s18 }
  0xc8   : > { %s180_s11 = scalar_lea.hbm %s2184_s2, %s768_s21  ;;  %s618_s14 = scalar_lea.vmem %s1607_s9, 6 [#allocation2] }
  0xc9   : > { %s1093_s7 = scalar_lea.hbm %s180_s11, 16  ;;  %p1098_p1 = scmp.lt.u32.totalorder %s180_s11, %s2184_s2 }
  0xca   : > { %p1094_p9 = scmp.ne.s32.totalorder %s180_s11, %s1093_s7  ;;  %p1099_p0 = scmp.lt.u32.totalorder %s1632_s4, %s1093_s7 }
  0xcb   : > { %p1101_p3 = scmp.lt.u32.totalorder %s1093_s7, %s180_s11 }
  0xcc   : > { %p1095_p11 = pnand %p1094_p9, %p886_p4  ;;  %p1100_p12 = por %p1099_p0, %p1098_p1 }
  0xce   : > { %p1096_p13 = pneg %p1095_p11  ;;  %p1102_p2 = por %p1101_p3, %p1100_p12 }
  0xd0   : > { %p1103_p5 = pnand %p1102_p2, %p1096_p13 }
  0xd2   : > { %1106 = shalt.err (!%p1103_p5)  }
  0xd3   : > { %s1107_s0 = scalar_lea.vmem %s1766_s25, 16  ;;  %p1114_p10 = scmp.lt.s32.totalorder %s1766_s25, %s1642_s26 }
  0xd4   : > { %p1108_p7 = scmp.ne.s32.totalorder %s1766_s25, %s1107_s0  ;;  %p1115_p9 = scmp.lt.s32.totalorder %s1645_s6, %s1107_s0 }
  0xd6   : > { %p1109_p6 = pnand %p1108_p7, %p886_p4  ;;  %p1116_p11 = por %p1115_p9, %p1114_p10 }
  0xd8   : > { %p1110_p8 = pneg %p1109_p6 }
  0xda   : > { %p1117_p0 = pnand %p1116_p11, %p1110_p8 }
  0xdc   : > { %1120 = shalt.err (!%p1117_p0)  }
  0xdd   : > { %848 = dma.hbm_to_vmem [thread:$0]  (%p886_p4), %s180_s11, 16, %s1766_s25, %s1761_s13 }
  0xde   : > { %s2250_s10 = smov (!%p886_p4, %s195_s10), 0  ;;  %s213_s27 = sadd.s32 7, %s1591_s18 }
  0xdf   : > { %s196_s8 = sld [smem:[%s849_s23 + %s2250_s10]]  ;;  %s209_s22 = sshll.u32 %s618_s14, 4  ;;  %s210_s22 = int_to_ptr.vmem [resolvable:$true] %s209_s22 }
  0xe0   : > { %s852_s21 = scalar_select %p886_p4, [#allocation5], [#allocation50] }
  0xe1   : > { %s2252_s27 = smov (!%p886_p4, %s213_s27), 0  ;;  %s626_s12 = scalar_lea.vmem %s1607_s9, 7 [#allocation2] }
  0xe2   : > { %s1814_s3 = sld [smem:[%s852_s21 + %s2252_s27]]  ;;  %s1817_s7 = scalar_lea.sflag %s1613_s15, 6 [#allocation3] }
  0xe3   : > { %s227_s0 = sshll.u32 %s626_s12, 4  ;;  %s228_s0 = int_to_ptr.vmem [resolvable:$true] %s227_s0 }
  0xe5   : > { %s771_s28 = sshll.u32 %s196_s8, 4 }
  0xe6   : > { %s198_s17 = scalar_lea.hbm %s2184_s2, %s771_s28 }
  0xe7   : > { %s1121_s24 = scalar_lea.hbm %s198_s17, 16  ;;  %p1126_p3 = scmp.lt.u32.totalorder %s198_s17, %s2184_s2 }
  0xe8   : > { %p1122_p13 = scmp.ne.s32.totalorder %s198_s17, %s1121_s24  ;;  %p1127_p2 = scmp.lt.u32.totalorder %s1632_s4, %s1121_s24 }
  0xe9   : > { %p1129_p7 = scmp.lt.u32.totalorder %s1121_s24, %s198_s17 }
  0xea   : > { %p1123_p1 = pnand %p1122_p13, %p886_p4  ;;  %p1128_p5 = por %p1127_p2, %p1126_p3 }
  0xec   : > { %p1124_p12 = pneg %p1123_p1  ;;  %p1130_p6 = por %p1129_p7, %p1128_p5 }
  0xee   : > { %p1131_p8 = pnand %p1130_p6, %p1124_p12 }
  0xf0   : > { %1134 = shalt.err (!%p1131_p8)  }
  0xf1   : > { %s1135_s14 = scalar_lea.vmem %s210_s22, 16  ;;  %p1142_p0 = scmp.lt.s32.totalorder %s210_s22, %s1642_s26 }
  0xf2   : > { %p1136_p10 = scmp.ne.s32.totalorder %s210_s22, %s1135_s14  ;;  %p1143_p13 = scmp.lt.s32.totalorder %s1645_s6, %s1135_s14 }
  0xf4   : > { %p1137_p9 = pnand %p1136_p10, %p886_p4  ;;  %p1144_p1 = por %p1143_p13, %p1142_p0 }
  0xf6   : > { %p1138_p11 = pneg %p1137_p9 }
  0xf8   : > { %p1145_p2 = pnand %p1144_p1, %p1138_p11 }
  0xfa   : > { %1148 = shalt.err (!%p1145_p2)  }
  0xfb   : > { %851 = dma.hbm_to_vmem [thread:$0]  (%p886_p4), %s198_s17, 16, %s210_s22, %s1817_s7 }
  0xfc   : > { %s1836_s24 = scalar_lea.sflag %s1613_s15, 7 [#allocation3]  ;;  %s774_s27 = sshll.u32 %s1814_s3, 4 }
  0xfd   : > { %s216_s12 = scalar_lea.hbm %s2184_s2, %s774_s27 }
  0xfe   : > { %s1149_s28 = scalar_lea.hbm %s216_s12, 16  ;;  %p1154_p7 = scmp.lt.u32.totalorder %s216_s12, %s2184_s2 }
  0xff   : > { %p1150_p12 = scmp.ne.s32.totalorder %s216_s12, %s1149_s28  ;;  %p1155_p6 = scmp.lt.u32.totalorder %s1632_s4, %s1149_s28 }
 0x100   : > { %p1157_p10 = scmp.lt.u32.totalorder %s1149_s28, %s216_s12 }
 0x101   : > { %p1151_p3 = pnand %p1150_p12, %p886_p4  ;;  %p1156_p8 = por %p1155_p6, %p1154_p7 }
 0x103   : > { %p1152_p5 = pneg %p1151_p3  ;;  %p1158_p9 = por %p1157_p10, %p1156_p8 }
 0x105   : > { %p1159_p11 = pnand %p1158_p9, %p1152_p5 }
 0x107   : > { %1162 = shalt.err (!%p1159_p11)  }
 0x108   : > { %s1163_s17 = scalar_lea.vmem %s228_s0, 16  ;;  %p1170_p2 = scmp.lt.s32.totalorder %s228_s0, %s1642_s26 }
 0x109   : > { %p1164_p0 = scmp.ne.s32.totalorder %s228_s0, %s1163_s17  ;;  %p1171_p12 = scmp.lt.s32.totalorder %s1645_s6, %s1163_s17 }
 0x10b   : > { %p1165_p13 = pnand %p1164_p0, %p886_p4  ;;  %p1172_p3 = por %p1171_p12, %p1170_p2 }
 0x10d   : > { %p1166_p1 = pneg %p1165_p13 }
 0x10f   : > { %p1173_p6 = pnand %p1172_p3, %p1166_p1 }
 0x111   : > { %1176 = shalt.err (!%p1173_p6)  }
 0x112   : > { %854 = dma.hbm_to_vmem [thread:$0]  (%p886_p4), %s216_s12, 16, %s228_s0, %s1836_s24 }
 0x113   : > { %s68_s22 = scalar_lea.vmem [#allocation7], %s1585_s16 }
 0x114   : > { %1451 = dma.done.wait %s1613_s15, 16 }
 0x115   : > { %1452 = vsyncadd %s1613_s15, 4294967280 }
 0x116   : > { %1453 = dma.done.wait %s1616_s19, 16 }
 0x117   : > { %1454 = vsyncadd %s1616_s19, 4294967280 }
 0x118   : > { %1455 = dma.done.wait %s1667_s5, 16 }
 0x119   : > { %1456 = vsyncadd %s1667_s5, 4294967280 }
 0x11a   : > { %1457 = dma.done.wait %s1724_s29, 16 }
 0x11b   : > { %1458 = vsyncadd %s1724_s29, 4294967280 }
 0x11c   : > { %1459 = dma.done.wait %s1758_s20, 16 }
 0x11d   : > { %1460 = vsyncadd %s1758_s20, 4294967280 }
 0x11e   : > { %1461 = dma.done.wait %s1761_s13, 16 }
 0x11f   : > { %1462 = vsyncadd %s1761_s13, 4294967280 }
 0x120   : > { %1463 = dma.done.wait %s1817_s7, 16 }
 0x121   : > { %1464 = vsyncadd %s1817_s7, 4294967280 }
 0x122   : > { %1465 = dma.done.wait %s1836_s24, 16 }
 0x123   : > { %1466 = vsyncadd %s1836_s24, 4294967280  ;;  %s2217_s1 = sld [smem:[#allocation78_spill]]  ;;  %p887_p4 = scmp.lt.s32.totalorder %s1554_s30, 2 }
 0x124   : > { %s269_s15 = sadd.s32 8, %s1591_s18  ;;  %s288_s5 = sadd.s32 9, %s1591_s18 }
 0x125   : > { %s856_s29 = scalar_select %p887_p4, [#allocation5], [#allocation51] }
 0x126   : > { %s2254_s15 = smov (!%p887_p4, %s269_s15), 0  ;;  %s306_s13 = sadd.s32 10, %s1591_s18 }
 0x127   : > { %s271_s3 = sld [smem:[%s856_s29 + %s2254_s15]]  ;;  %s2256_s5 = smov (!%p887_p4, %s288_s5), 0 }
 0x128   : > { %s859_s10 = scalar_select %p887_p4, [#allocation5], [#allocation52] }
 0x129   : > { %s270_s19 = ssub.s32 1, %s2217_s1 }
 0x12a   : > { %s787_s20 = sshll.u32 %s270_s19, 3  ;;  %s1894_s21 = sld [smem:[%s859_s10 + %s2256_s5]] }
 0x12b   : > { %s1881_s7 = scalar_lea.vmem [#allocation2], %s787_s20  ;;  %s1891_s14 = scalar_lea.sflag [#allocation3], %s787_s20 }
 0x12c   : > { %s284_s0 = sshll.u32 %s1881_s7, 4  ;;  %s663_s23 = scalar_lea.vmem %s1881_s7, 1 [#allocation2]  ;;  %s1884_s0 = int_to_ptr.vmem [resolvable:$true] %s284_s0 }
 0x12d   : > { %s666_s24 = scalar_lea.sflag %s1891_s14, 1 [#allocation3]  ;;  %s302_s27 = sshll.u32 %s663_s23, 4  ;;  %s1899_s27 = int_to_ptr.vmem [resolvable:$true] %s302_s27 }
 0x12e   : > { %s786_s8 = sshll.u32 %s271_s3, 4 }
 0x12f   : > { %s273_s25 = scalar_lea.hbm %s2184_s2, %s786_s8 }
 0x130   : > { %s1177_s11 = scalar_lea.hbm %s273_s25, 16  ;;  %p1182_p10 = scmp.lt.u32.totalorder %s273_s25, %s2184_s2 }
 0x131   : > { %p1178_p5 = scmp.ne.s32.totalorder %s273_s25, %s1177_s11  ;;  %p1183_p9 = scmp.lt.u32.totalorder %s1632_s4, %s1177_s11 }
 0x132   : > { %p1185_p0 = scmp.lt.u32.totalorder %s1177_s11, %s273_s25 }
 0x133   : > { %p1179_p7 = pnand %p1178_p5, %p887_p4  ;;  %p1184_p11 = por %p1183_p9, %p1182_p10 }
 0x135   : > { %p1180_p8 = pneg %p1179_p7  ;;  %p1186_p13 = por %p1185_p0, %p1184_p11 }
 0x137   : > { %p1187_p1 = pnand %p1186_p13, %p1180_p8 }
 0x139   : > { %1190 = shalt.err (!%p1187_p1)  }
 0x13a   : > { %s1191_s15 = scalar_lea.vmem %s1884_s0, 16  ;;  %p1198_p6 = scmp.lt.s32.totalorder %s1884_s0, %s1642_s26 }
 0x13b   : > { %p1192_p2 = scmp.ne.s32.totalorder %s1884_s0, %s1191_s15  ;;  %p1199_p5 = scmp.lt.s32.totalorder %s1645_s6, %s1191_s15 }
 0x13d   : > { %p1193_p12 = pnand %p1192_p2, %p887_p4  ;;  %p1200_p7 = por %p1199_p5, %p1198_p6 }
 0x13f   : > { %p1194_p3 = pneg %p1193_p12 }
 0x141   : > { %p1201_p9 = pnand %p1200_p7, %p1194_p3 }
 0x143   : > { %1204 = shalt.err (!%p1201_p9)  }
 0x144   : > { %858 = dma.hbm_to_vmem [thread:$0]  (%p887_p4), %s273_s25, 16, %s1884_s0, %s1891_s14 }
 0x145   : > { %s862_s19 = scalar_select %p887_p4, [#allocation5], [#allocation53] }
 0x146   : > { %s2258_s13 = smov (!%p887_p4, %s306_s13), 0  ;;  %s671_s5 = scalar_lea.vmem %s1881_s7, 2 [#allocation2] }
 0x147   : > { %s674_s29 = scalar_lea.sflag %s1891_s14, 2 [#allocation3]  ;;  %s788_s20 = sshll.u32 %s1894_s21, 4 }
 0x148   : > { %s1927_s3 = sld [smem:[%s862_s19 + %s2258_s13]]  ;;  %s291_s8 = scalar_lea.hbm %s2184_s2, %s788_s20 }
 0x149   : > { %s320_s12 = sshll.u32 %s671_s5, 4  ;;  %s1205_s28 = scalar_lea.hbm %s291_s8, 16  ;;  %s1950_s12 = int_to_ptr.vmem [resolvable:$true] %s320_s12 }
 0x14a   : > { %p1206_p8 = scmp.ne.s32.totalorder %s291_s8, %s1205_s28  ;;  %p1210_p0 = scmp.lt.u32.totalorder %s291_s8, %s2184_s2 }
 0x14b   : > { %p1211_p13 = scmp.lt.u32.totalorder %s1632_s4, %s1205_s28  ;;  %p1213_p2 = scmp.lt.u32.totalorder %s1205_s28, %s291_s8 }
 0x14c   : > { %p1207_p10 = pnand %p1206_p8, %p887_p4 }
 0x14d   : > { %p1212_p1 = por %p1211_p13, %p1210_p0 }
 0x14e   : > { %p1208_p11 = pneg %p1207_p10 }
 0x14f   : > { %p1214_p12 = por %p1213_p2, %p1212_p1 }
 0x151   : > { %p1215_p3 = pnand %p1214_p12, %p1208_p11 }
 0x153   : > { %1218 = shalt.err (!%p1215_p3)  }
 0x154   : > { %s1219_s13 = scalar_lea.vmem %s1899_s27, 16  ;;  %p1226_p9 = scmp.lt.s32.totalorder %s1899_s27, %s1642_s26 }
 0x155   : > { %p1220_p6 = scmp.ne.s32.totalorder %s1899_s27, %s1219_s13  ;;  %p1227_p8 = scmp.lt.s32.totalorder %s1645_s6, %s1219_s13 }
 0x157   : > { %p1221_p5 = pnand %p1220_p6, %p887_p4  ;;  %p1228_p10 = por %p1227_p8, %p1226_p9 }
 0x159   : > { %p1222_p7 = pneg %p1221_p5 }
 0x15b   : > { %p1229_p0 = pnand %p1228_p10, %p1222_p7 }
 0x15d   : > { %1232 = shalt.err (!%p1229_p0)  }
 0x15e   : > { %861 = dma.hbm_to_vmem [thread:$0]  (%p887_p4), %s291_s8, 16, %s1899_s27, %s666_s24 }
 0x15f   : > { %s324_s21 = sadd.s32 11, %s1591_s18  ;;  %s791_s17 = sshll.u32 %s1927_s3, 4 }
 0x160   : > { %s865_s11 = scalar_select %p887_p4, [#allocation5], [#allocation54] }
 0x161   : > { %s2260_s21 = smov (!%p887_p4, %s324_s21), 0  ;;  %s679_s1 = scalar_lea.vmem %s1881_s7, 3 [#allocation2] }
 0x162   : > { %s309_s5 = scalar_lea.hbm %s2184_s2, %s791_s17  ;;  %s1962_s20 = sld [smem:[%s865_s11 + %s2260_s21]] }
 0x163   : > { %s1233_s23 = scalar_lea.hbm %s309_s5, 16  ;;  %p1238_p2 = scmp.lt.u32.totalorder %s309_s5, %s2184_s2 }
 0x164   : > { %p1234_p11 = scmp.ne.s32.totalorder %s309_s5, %s1233_s23  ;;  %p1239_p12 = scmp.lt.u32.totalorder %s1632_s4, %s1233_s23 }
 0x165   : > { %p1241_p6 = scmp.lt.u32.totalorder %s1233_s23, %s309_s5 }
 0x166   : > { %p1235_p13 = pnand %p1234_p11, %p887_p4  ;;  %p1240_p3 = por %p1239_p12, %p1238_p2 }
 0x168   : > { %p1236_p1 = pneg %p1235_p13  ;;  %p1242_p5 = por %p1241_p6, %p1240_p3 }
 0x16a   : > { %p1243_p7 = pnand %p1242_p5, %p1236_p1 }
 0x16c   : > { %1246 = shalt.err (!%p1243_p7)  }
 0x16d   : > { %s1247_s3 = scalar_lea.vmem %s1950_s12, 16  ;;  %p1254_p0 = scmp.lt.s32.totalorder %s1950_s12, %s1642_s26 }
 0x16e   : > { %p1248_p9 = scmp.ne.s32.totalorder %s1950_s12, %s1247_s3  ;;  %p1255_p11 = scmp.lt.s32.totalorder %s1645_s6, %s1247_s3 }
 0x170   : > { %p1249_p8 = pnand %p1248_p9, %p887_p4  ;;  %p1256_p13 = por %p1255_p11, %p1254_p0 }
 0x172   : > { %p1250_p10 = pneg %p1249_p8 }
 0x174   : > { %p1257_p2 = pnand %p1256_p13, %p1250_p10 }
 0x176   : > { %1260 = shalt.err (!%p1257_p2)  }
 0x177   : > { %864 = dma.hbm_to_vmem [thread:$0]  (%p887_p4), %s309_s5, 16, %s1950_s12, %s674_s29 }
 0x178   : > { %s682_s10 = scalar_lea.sflag %s1891_s14, 3 [#allocation3]  ;;  %s338_s8 = sshll.u32 %s679_s1, 4  ;;  %s1983_s8 = int_to_ptr.vmem [resolvable:$true] %s338_s8 }
 0x179   : > { %s342_s28 = sadd.s32 12, %s1591_s18  ;;  %s794_s25 = sshll.u32 %s1962_s20, 4 }
 0x17a   : > { %s868_s0 = scalar_select %p887_p4, [#allocation5], [#allocation55] }
 0x17b   : > { %s2262_s28 = smov (!%p887_p4, %s342_s28), 0  ;;  %s687_s13 = scalar_lea.vmem %s1881_s7, 4 [#allocation2] }
 0x17c   : > { %s327_s17 = scalar_lea.hbm %s2184_s2, %s794_s25  ;;  %s1995_s15 = sld [smem:[%s868_s0 + %s2262_s28]] }
 0x17d   : > { %s1261_s19 = scalar_lea.hbm %s327_s17, 16  ;;  %p1266_p6 = scmp.lt.u32.totalorder %s327_s17, %s2184_s2 }
 0x17e   : > { %p1262_p1 = scmp.ne.s32.totalorder %s327_s17, %s1261_s19  ;;  %p1267_p5 = scmp.lt.u32.totalorder %s1632_s4, %s1261_s19 }
 0x17f   : > { %p1269_p9 = scmp.lt.u32.totalorder %s1261_s19, %s327_s17 }
 0x180   : > { %p1263_p12 = pnand %p1262_p1, %p887_p4  ;;  %p1268_p7 = por %p1267_p5, %p1266_p6 }
 0x182   : > { %p1264_p3 = pneg %p1263_p12  ;;  %p1270_p8 = por %p1269_p9, %p1268_p7 }
 0x184   : > { %p1271_p10 = pnand %p1270_p8, %p1264_p3 }
 0x186   : > { %1274 = shalt.err (!%p1271_p10)  }
 0x187   : > { %s1275_s1 = scalar_lea.vmem %s1983_s8, 16  ;;  %p1282_p2 = scmp.lt.s32.totalorder %s1983_s8, %s1642_s26 }
 0x188   : > { %p1276_p0 = scmp.ne.s32.totalorder %s1983_s8, %s1275_s1  ;;  %p1283_p1 = scmp.lt.s32.totalorder %s1645_s6, %s1275_s1 }
 0x18a   : > { %p1277_p11 = pnand %p1276_p0, %p887_p4  ;;  %p1284_p12 = por %p1283_p1, %p1282_p2 }
 0x18c   : > { %p1278_p13 = pneg %p1277_p11 }
 0x18e   : > { %p1285_p5 = pnand %p1284_p12, %p1278_p13 }
 0x190   : > { %1288 = shalt.err (!%p1285_p5)  }
 0x191   : > { %867 = dma.hbm_to_vmem [thread:$0]  (%p887_p4), %s327_s17, 16, %s1983_s8, %s682_s10 }
 0x192   : > { %s690_s5 = scalar_lea.sflag %s1891_s14, 4 [#allocation3]  ;;  %s356_s20 = sshll.u32 %s687_s13, 4  ;;  %s2016_s20 = int_to_ptr.vmem [resolvable:$true] %s356_s20 }
 0x193   : > { %s360_s23 = sadd.s32 13, %s1591_s18  ;;  %s797_s27 = sshll.u32 %s1995_s15, 4 }
 0x194   : > { %s871_s24 = scalar_select %p887_p4, [#allocation5], [#allocation56] }
 0x195   : > { %s2264_s23 = smov (!%p887_p4, %s360_s23), 0  ;;  %s695_s3 = scalar_lea.vmem %s1881_s7, 5 [#allocation2] }
 0x196   : > { %s345_s25 = scalar_lea.hbm %s2184_s2, %s797_s27  ;;  %s2028_s21 = sld [smem:[%s871_s24 + %s2264_s23]] }
 0x197   : > { %s1289_s11 = scalar_lea.hbm %s345_s25, 16  ;;  %p1294_p9 = scmp.lt.u32.totalorder %s345_s25, %s2184_s2 }
 0x198   : > { %p1290_p3 = scmp.ne.s32.totalorder %s345_s25, %s1289_s11  ;;  %p1295_p8 = scmp.lt.u32.totalorder %s1632_s4, %s1289_s11 }
 0x199   : > { %p1297_p0 = scmp.lt.u32.totalorder %s1289_s11, %s345_s25 }
 0x19a   : > { %p1291_p6 = pnand %p1290_p3, %p887_p4  ;;  %p1296_p10 = por %p1295_p8, %p1294_p9 }
 0x19c   : > { %p1292_p7 = pneg %p1291_p6  ;;  %p1298_p11 = por %p1297_p0, %p1296_p10 }
 0x19e   : > { %p1299_p13 = pnand %p1298_p11, %p1292_p7 }
 0x1a0   : > { %1302 = shalt.err (!%p1299_p13)  }
 0x1a1   : > { %s1303_s13 = scalar_lea.vmem %s2016_s20, 16  ;;  %p1310_p5 = scmp.lt.s32.totalorder %s2016_s20, %s1642_s26 }
 0x1a2   : > { %p1304_p2 = scmp.ne.s32.totalorder %s2016_s20, %s1303_s13  ;;  %p1311_p3 = scmp.lt.s32.totalorder %s1645_s6, %s1303_s13 }
 0x1a4   : > { %p1305_p1 = pnand %p1304_p2, %p887_p4  ;;  %p1312_p6 = por %p1311_p3, %p1310_p5 }
 0x1a6   : > { %p1306_p12 = pneg %p1305_p1 }
 0x1a8   : > { %p1313_p8 = pnand %p1312_p6, %p1306_p12 }
 0x1aa   : > { %1316 = shalt.err (!%p1313_p8)  }
 0x1ab   : > { %870 = dma.hbm_to_vmem [thread:$0]  (%p887_p4), %s345_s25, 16, %s2016_s20, %s690_s5 }
 0x1ac   : > { %s698_s17 = scalar_lea.sflag %s1891_s14, 5 [#allocation3]  ;;  %s374_s15 = sshll.u32 %s695_s3, 4  ;;  %s2049_s15 = int_to_ptr.vmem [resolvable:$true] %s374_s15 }
 0x1ad   : > { %s378_s19 = sadd.s32 14, %s1591_s18  ;;  %s800_s12 = sshll.u32 %s2028_s21, 4 }
 0x1ae   : > { %s874_s29 = scalar_select %p887_p4, [#allocation5], [#allocation57] }
 0x1af   : > { %s2266_s19 = smov (!%p887_p4, %s378_s19), 0  ;;  %s703_s1 = scalar_lea.vmem %s1881_s7, 6 [#allocation2] }
 0x1b0   : > { %s363_s27 = scalar_lea.hbm %s2184_s2, %s800_s12  ;;  %s2061_s28 = sld [smem:[%s874_s29 + %s2266_s19]] }
 0x1b1   : > { %s1317_s0 = scalar_lea.hbm %s363_s27, 16  ;;  %p1322_p0 = scmp.lt.u32.totalorder %s363_s27, %s2184_s2 }
 0x1b2   : > { %p1318_p7 = scmp.ne.s32.totalorder %s363_s27, %s1317_s0  ;;  %p1323_p11 = scmp.lt.u32.totalorder %s1632_s4, %s1317_s0 }
 0x1b3   : > { %p1325_p2 = scmp.lt.u32.totalorder %s1317_s0, %s363_s27 }
 0x1b4   : > { %p1319_p9 = pnand %p1318_p7, %p887_p4  ;;  %p1324_p13 = por %p1323_p11, %p1322_p0 }
 0x1b6   : > { %p1320_p10 = pneg %p1319_p9  ;;  %p1326_p1 = por %p1325_p2, %p1324_p13 }
 0x1b8   : > { %p1327_p12 = pnand %p1326_p1, %p1320_p10 }
 0x1ba   : > { %1330 = shalt.err (!%p1327_p12)  }
 0x1bb   : > { %s1331_s3 = scalar_lea.vmem %s2049_s15, 16  ;;  %p1338_p8 = scmp.lt.s32.totalorder %s2049_s15, %s1642_s26 }
 0x1bc   : > { %p1332_p5 = scmp.ne.s32.totalorder %s2049_s15, %s1331_s3  ;;  %p1339_p7 = scmp.lt.s32.totalorder %s1645_s6, %s1331_s3 }
 0x1be   : > { %p1333_p3 = pnand %p1332_p5, %p887_p4  ;;  %p1340_p9 = por %p1339_p7, %p1338_p8 }
 0x1c0   : > { %p1334_p6 = pneg %p1333_p3 }
 0x1c2   : > { %p1341_p0 = pnand %p1340_p9, %p1334_p6 }
 0x1c4   : > { %1344 = shalt.err (!%p1341_p0)  }
 0x1c5   : > { %873 = dma.hbm_to_vmem [thread:$0]  (%p887_p4), %s363_s27, 16, %s2049_s15, %s698_s17 }
 0x1c6   : > { %s706_s25 = scalar_lea.sflag %s1891_s14, 6 [#allocation3]  ;;  %s392_s21 = sshll.u32 %s703_s1, 4  ;;  %s2082_s21 = int_to_ptr.vmem [resolvable:$true] %s392_s21 }
 0x1c7   : > { %s396_s11 = sadd.s32 15, %s1591_s18  ;;  %s803_s8 = sshll.u32 %s2061_s28, 4 }
 0x1c8   : > { %s877_s10 = scalar_select %p887_p4, [#allocation5], [#allocation58] }
 0x1c9   : > { %s2268_s11 = smov (!%p887_p4, %s396_s11), 0  ;;  %s711_s13 = scalar_lea.vmem %s1881_s7, 7 [#allocation2] }
 0x1ca   : > { %s381_s12 = scalar_lea.hbm %s2184_s2, %s803_s8  ;;  %s397_s23 = sld [smem:[%s877_s10 + %s2268_s11]] }
 0x1cb   : > { %s1345_s24 = scalar_lea.hbm %s381_s12, 16  ;;  %p1350_p2 = scmp.lt.u32.totalorder %s381_s12, %s2184_s2 }
 0x1cc   : > { %p1346_p10 = scmp.ne.s32.totalorder %s381_s12, %s1345_s24  ;;  %p1351_p1 = scmp.lt.u32.totalorder %s1632_s4, %s1345_s24 }
 0x1cd   : > { %p1353_p5 = scmp.lt.u32.totalorder %s1345_s24, %s381_s12 }
 0x1ce   : > { %p1347_p11 = pnand %p1346_p10, %p887_p4  ;;  %p1352_p12 = por %p1351_p1, %p1350_p2 }
 0x1d0   : > { %p1348_p13 = pneg %p1347_p11  ;;  %p1354_p3 = por %p1353_p5, %p1352_p12 }
 0x1d2   : > { %p1355_p6 = pnand %p1354_p3, %p1348_p13 }
 0x1d4   : > { %1358 = shalt.err (!%p1355_p6)  }
 0x1d5   : > { %s1359_s18 = scalar_lea.vmem %s2082_s21, 16  ;;  %p1366_p0 = scmp.lt.s32.totalorder %s2082_s21, %s1642_s26 }
 0x1d6   : > { %p1360_p8 = scmp.ne.s32.totalorder %s2082_s21, %s1359_s18  ;;  %p1367_p10 = scmp.lt.s32.totalorder %s1645_s6, %s1359_s18 }
 0x1d8   : > { %p1361_p7 = pnand %p1360_p8, %p887_p4  ;;  %p1368_p11 = por %p1367_p10, %p1366_p0 }
 0x1da   : > { %p1362_p9 = pneg %p1361_p7 }
 0x1dc   : > { %p1369_p1 = pnand %p1368_p11, %p1362_p9 }
 0x1de   : > { %1372 = shalt.err (!%p1369_p1)  }
 0x1df   : > { %876 = dma.hbm_to_vmem [thread:$0]  (%p887_p4), %s381_s12, 16, %s2082_s21, %s706_s25 }
 0x1e0   : > { %s410_s7 = sshll.u32 %s711_s13, 4  ;;  %s714_s1 = scalar_lea.sflag %s1891_s14, 7 [#allocation3]  ;;  %s411_s7 = int_to_ptr.vmem [resolvable:$true] %s410_s7 }
 0x1e1   : > { %s806_s27 = sshll.u32 %s397_s23, 4 }
 0x1e2   : > { %s399_s5 = scalar_lea.hbm %s2184_s2, %s806_s27 }
 0x1e3   : > { %s1373_s20 = scalar_lea.hbm %s399_s5, 16  ;;  %p1378_p5 = scmp.lt.u32.totalorder %s399_s5, %s2184_s2 }
 0x1e4   : > { %p1374_p13 = scmp.ne.s32.totalorder %s399_s5, %s1373_s20  ;;  %p1379_p3 = scmp.lt.u32.totalorder %s1632_s4, %s1373_s20 }
 0x1e5   : > { %p1381_p8 = scmp.lt.u32.totalorder %s1373_s20, %s399_s5 }
 0x1e6   : > { %p1375_p2 = pnand %p1374_p13, %p887_p4  ;;  %p1380_p6 = por %p1379_p3, %p1378_p5 }
 0x1e8   : > { %p1376_p12 = pneg %p1375_p2  ;;  %p1382_p7 = por %p1381_p8, %p1380_p6 }
 0x1ea   : > { %p1383_p9 = pnand %p1382_p7, %p1376_p12 }
 0x1ec   : > { %1386 = shalt.err (!%p1383_p9)  }
 0x1ed   : > { %s1387_s14 = scalar_lea.vmem %s411_s7, 16  ;;  %p1394_p1 = scmp.lt.s32.totalorder %s411_s7, %s1642_s26 }
 0x1ee   : > { %p1388_p0 = scmp.ne.s32.totalorder %s411_s7, %s1387_s14  ;;  %p1395_p13 = scmp.lt.s32.totalorder %s1645_s6, %s1387_s14 }
 0x1f0   : > { %p1389_p10 = pnand %p1388_p0, %p887_p4  ;;  %p1396_p2 = por %p1395_p13, %p1394_p1 }
 0x1f2   : > { %p1390_p11 = pneg %p1389_p10 }
 0x1f4   : > { %p1397_p3 = pnand %p1396_p2, %p1390_p11 }
 0x1f6   : > { %1400 = shalt.err (!%p1397_p3)  }
 0x1f7   : > { %s2218_s4 = sld [smem:[#allocation77_spill]]  ;;  %s2220_s21 = sld [smem:[#allocation76_spill]] }
 0x1f8   : > { %s2219_s25 = sld [smem:[#allocation70_spill]]  ;;  %s433_s8 = sshll.u32 %s68_s22, 4  ;;  %s2136_s8 = int_to_ptr.vmem [resolvable:$true] %s433_s8 }
 0x1f9   : > { %879 = dma.hbm_to_vmem [thread:$0]  (%p887_p4), %s399_s5, 16, %s411_s7, %s714_s1 }
 0x1fa   : > { %s2221_s29 = sld [smem:[#allocation79_spill]]  ;;  %v415_v0 = vld [vmem:[%s1607_s9] sm:$0xff]  ;;  %s1401_s23 = scalar_lea.vmem %s2136_s8, 128 }
 0x1fb   : > { %416 = vst [vmem:[%s68_s22] sm:$0xff] %v415_v0  ;;  %p1402_p4 = scmp.ne.s32.totalorder %s2136_s8, %s1401_s23  ;;  %s1494_s24 = smov [#allocation7]  }
 0x1fc   : > { %s1405_s17 = sshll.u32 %s1494_s24, 4  ;;  %s1406_s17 = int_to_ptr.vmem [resolvable:$false] %s1405_s17 }
 0x1fd   : > { %s811_s10 = sshll.u32 %s2218_s4, 7  ;;  %p2224_p12 = scmp.ne.s32.totalorder %s2220_s21, 0 }
 0x1fe   : > { %s2223_s30 = sand.u32 1, %s2219_s25   ;;  %s1407_s15 = scalar_lea.vmem %s1406_s17, 256 }
 0x1ff   : > { %s418_s6 = scalar_lea.sflag [#allocation8], %s2223_s30  ;;  %p1403_p5 = pnand %p1402_p4, %p2224_p12 }
 0x200   : > { %s2222_s12 = smov %s2221_s29  ;;  %s2134_s26 = scalar_lea.hbm %s2221_s29, %s811_s10 }
 0x201   : > { %p1404_p6 = pneg %p1403_p5  ;;  %p1408_p8 = scmp.lt.s32.totalorder %s2136_s8, %s1406_s17 }
 0x202   : > { %p1409_p7 = scmp.lt.s32.totalorder %s1407_s15, %s1401_s23 }
 0x204   : > { %p1410_p9 = por %p1409_p7, %p1408_p8 }
 0x206   : > { %p1411_p0 = pnand %p1410_p9, %p1404_p6 }
 0x208   : > { %1414 = shalt.err (!%p1411_p0)
}
 0x209   : > { %s1415_s16 = scalar_lea.hbm %s2134_s26, 128  ;;  %s1419_s18 = scalar_lea.hbm %s2222_s12, 512 }
 0x20a   : > { %p1416_p10 = scmp.ne.s32.totalorder %s2134_s26, %s1415_s16  ;;  %p1420_p13 = scmp.lt.u32.totalorder %s2134_s26, %s2222_s12 }
 0x20b   : > { %p1421_p2 = scmp.lt.u32.totalorder %s1419_s18, %s1415_s16  ;;  %p1423_p4 = scmp.lt.u32.totalorder %s1415_s16, %s2134_s26 }
 0x20c   : > { %p1417_p11 = pnand %p1416_p10, %p2224_p12 }
 0x20d   : > { %p1422_p3 = por %p1421_p2, %p1420_p13 }
 0x20e   : > { %p1418_p1 = pneg %p1417_p11 }
 0x20f   : > { %p1424_p5 = por %p1423_p4, %p1422_p3 }
 0x211   : > { %p1425_p6 = pnand %p1424_p5, %p1418_p1 }
 0x213   : > { %1428 = shalt.err (!%p1425_p6)
}
 0x214   : > { %880 = dma.vmem_to_hbm [thread:$0]  (%p2224_p12), %s2136_s8, 128, %s2134_s26, %s418_s6  }
 0x215 PF: > { %s2225_s27 = sld [smem:[#allocation71_spill]]  ;;  %s2226_s28 = sld [smem:[#allocation69_spill]] }
 0x216   : > { %s2227_s0 = sld [smem:[#allocation74_spill]] }
 0x21b   : > { %p888_p8 = scmp.ge.s32.totalorder %s2225_s27, 1  ;;  %s445_s5 = sand.u32 1, %s2226_s28  }
 0x21c   : > { %p2228_p7 = scmp.ne.s32.totalorder %s2227_s0, 0  ;;  %s446_s20 = scalar_lea.sflag [#allocation8], %s445_s5 }
 0x21e   : > { %p883_p9 = pnand %p888_p8, %p2228_p7 }
 0x220   : > { %1468 = dma.done.wait (!%p883_p9), %s446_s20, 128  }
 0x221   : > { %1470 = vsyncadd (!%p883_p9), %s446_s20, 4294967168  ;;  %s24_s29 = sadd.s32 1, %s2225_s27   ;;  %s2229_s0 = sld [smem:[#allocation70_spill]] }
 0x222   : > { %p21_p0 = scmp.ge.s32.totalorder %s24_s29, 5   ;;  %s2230_s27 = sld [smem:[#allocation75_spill]] }
 0x223   : > { %s2231_s1 = sld [smem:[#allocation72_spill]]  ;;  %s2232_s28 = sld [smem:[#allocation73_spill]] }
 0x224   :  { %23 = sbr.rel (!%p21_p0) target bundleno = 26 (0x1a), region = 188 }
 0x22b   :  { %451 = vsyncpa [#allocation8], 1 }
 0x22c   :  { %453 = vsyncpa [#allocation8 + $0x1], 1 }
 0x22d   :  { %454 = vsyncmov [#allocation3] }
 0x230   :  { %s455_s3 = vpop.sfrf %454 }
 0x231   :  { %p814_p12 = scmp.ne.s32.totalorder %s455_s3, 0 }
 0x233   :  { %459 = shalt.err (%p814_p12)  }
 0x234   :  { %461 = vsyncmov [#allocation3 + $0x1] }
 0x237   :  { %s462_s11 = vpop.sfrf %461 }
 0x238   :  { %p815_p10 = scmp.ne.s32.totalorder %s462_s11, 0 }
 0x23a   :  { %466 = shalt.err (%p815_p10)  }
 0x23b   :  { %468 = vsyncmov [#allocation3 + $0x2] }
 0x23e   :  { %s469_s14 = vpop.sfrf %468 }
 0x23f   :  { %p816_p11 = scmp.ne.s32.totalorder %s469_s14, 0 }
 0x241   :  { %473 = shalt.err (%p816_p11)  }
 0x242   :  { %475 = vsyncmov [#allocation3 + $0x3] }
 0x245   :  { %s476_s4 = vpop.sfrf %475 }
 0x246   :  { %p817_p1 = scmp.ne.s32.totalorder %s476_s4, 0 }
 0x248   :  { %480 = shalt.err (%p817_p1)  }
 0x249   :  { %482 = vsyncmov [#allocation3 + $0x4] }
 0x24c   :  { %s483_s25 = vpop.sfrf %482 }
 0x24d   :  { %p818_p13 = scmp.ne.s32.totalorder %s483_s25, 0 }
 0x24f   :  { %487 = shalt.err (%p818_p13)  }
 0x250   :  { %489 = vsyncmov [#allocation3 + $0x5] }
 0x253   :  { %s490_s2 = vpop.sfrf %489 }
 0x254   :  { %p819_p2 = scmp.ne.s32.totalorder %s490_s2, 0 }
 0x256   :  { %494 = shalt.err (%p819_p2)  }
 0x257   :  { %496 = vsyncmov [#allocation3 + $0x6] }
 0x25a   :  { %s497_s21 = vpop.sfrf %496 }
 0x25b   :  { %p820_p3 = scmp.ne.s32.totalorder %s497_s21, 0 }
 0x25d   :  { %501 = shalt.err (%p820_p3)  }
 0x25e   :  { %503 = vsyncmov [#allocation3 + $0x7] }
 0x261   :  { %s504_s10 = vpop.sfrf %503 }
 0x262   :  { %p821_p4 = scmp.ne.s32.totalorder %s504_s10, 0 }
 0x264   :  { %508 = shalt.err (%p821_p4)  }
 0x265   :  { %510 = vsyncmov [#allocation3 + $0x8] }
 0x268   :  { %s511_s8 = vpop.sfrf %510 }
 0x269   :  { %p822_p5 = scmp.ne.s32.totalorder %s511_s8, 0 }
 0x26b   :  { %515 = shalt.err (%p822_p5)  }
 0x26c   :  { %517 = vsyncmov [#allocation3 + $0x9] }
 0x26f   :  { %s518_s13 = vpop.sfrf %517 }
 0x270   :  { %p823_p6 = scmp.ne.s32.totalorder %s518_s13, 0 }
 0x272   :  { %522 = shalt.err (%p823_p6)  }
 0x273   :  { %524 = vsyncmov [#allocation3 + $0xa] }
 0x276   :  { %s525_s19 = vpop.sfrf %524 }
 0x277   :  { %p824_p8 = scmp.ne.s32.totalorder %s525_s19, 0 }
 0x279   :  { %529 = shalt.err (%p824_p8)  }
 0x27a   :  { %531 = vsyncmov [#allocation3 + $0xb] }
 0x27d   :  { %s532_s12 = vpop.sfrf %531 }
 0x27e   :  { %p825_p7 = scmp.ne.s32.totalorder %s532_s12, 0 }
 0x280   :  { %536 = shalt.err (%p825_p7)  }
 0x281   :  { %538 = vsyncmov [#allocation3 + $0xc] }
 0x284   :  { %s539_s29 = vpop.sfrf %538 }
 0x285   :  { %p826_p9 = scmp.ne.s32.totalorder %s539_s29, 0 }
 0x287   :  { %543 = shalt.err (%p826_p9)  }
 0x288   :  { %545 = vsyncmov [#allocation3 + $0xd] }
 0x28b   :  { %s546_s26 = vpop.sfrf %545 }
 0x28c   :  { %p827_p0 = scmp.ne.s32.totalorder %s546_s26, 0 }
 0x28e   :  { %550 = shalt.err (%p827_p0)  }
 0x28f   :  { %552 = vsyncmov [#allocation3 + $0xe] }
 0x292   :  { %s553_s30 = vpop.sfrf %552 }
 0x293   :  { %p828_p12 = scmp.ne.s32.totalorder %s553_s30, 0 }
 0x295   :  { %557 = shalt.err (%p828_p12)  }
 0x296   :  { %559 = vsyncmov [#allocation3 + $0xf] }
 0x299   :  { %s560_s6 = vpop.sfrf %559 }
 0x29a   :  { %p829_p10 = scmp.ne.s32.totalorder %s560_s6, 0 }
 0x29c   :  { %564 = shalt.err (%p829_p10)  }

</bundles_post_ra>
